<compile_context>
chip_gen: v6e
topology: v6e:2x2x1
jax: 0.10.0
libtpu: 0.0.40
codegen_flags: <defaults>
</compile_context>

<pallas_src>
import jax
import jax.numpy as jnp
import numpy as np
from jax.experimental import pallas as pl
from jax.experimental.pallas import tpu as pltpu

_LANE = 128


def _round_up(x, m):
    return ((x + m - 1) // m) * m


def _logits_kernel(a_ref, b_ref, wa_ref, ba_ref, wb_ref, bb_ref, logits_ref):
    """Accumulate the two (B, B) cross-attention logit matrices over S tiles."""
    # a_ref, b_ref : (B, C, TS) f32 input tiles
    # wa_ref       : (2C, C)  stacked [W_query_a ; W_key_a]   (applied to a)
    # wb_ref       : (2C, C)  stacked [W_key_b   ; W_query_b] (applied to b)
    # ba_ref/bb_ref: (2C, 1)  matching stacked biases
    # logits_ref   : (2*B*B, 128) accumulator; row = dir*B*B + i*B + j,
    #                dir 0 = a->b, dir 1 = b->a (value replicated across lanes).
    B, C, _ = a_ref.shape

    @pl.when(pl.program_id(0) == 0)
    def _init():
        logits_ref[...] = jnp.zeros_like(logits_ref)

    q_a, k_a, k_b, q_b = [], [], [], []
    for i in range(B):
        proj_a = jnp.dot(wa_ref[...], a_ref[i],
                         preferred_element_type=jnp.float32) + ba_ref[...]
        proj_b = jnp.dot(wb_ref[...], b_ref[i],
                         preferred_element_type=jnp.float32) + bb_ref[...]
        q_a.append(proj_a[:C])
        k_a.append(proj_a[C:])
        k_b.append(proj_b[:C])
        q_b.append(proj_b[C:])

    for i in range(B):
        for j in range(B):
            r_ab = i * B + j              # direction 0: query from a, key from b
            r_ba = B * B + i * B + j      # direction 1: query from b, key from a
            part_ab = jnp.sum(q_a[i] * k_b[j], keepdims=True)   # (1, 1)
            part_ba = jnp.sum(q_b[i] * k_a[j], keepdims=True)   # (1, 1)
            logits_ref[r_ab:r_ab + 1, :] = logits_ref[r_ab:r_ab + 1, :] + part_ab
            logits_ref[r_ba:r_ba + 1, :] = logits_ref[r_ba:r_ba + 1, :] + part_ba


def _output_kernel(logits_ref, a_ref, b_ref, wv_ref, bv_ref, oab_ref, oba_ref):
    """Per-tile value projection + softmax-weighted batch mixing."""
    # logits_ref : (2*B*B, 128) accumulated logits (lane-replicated)
    # a_ref,b_ref: (B, C, TS) input tiles
    # wv_ref     : (2, C, C)  [0] = W_value_b (applied to b), [1] = W_value_a (a)
    # bv_ref     : (2, C, 1)  matching biases
    B, C, _ = a_ref.shape

    v_b = [jnp.dot(wv_ref[0], b_ref[j], preferred_element_type=jnp.float32)
           + bv_ref[0] for j in range(B)]
    v_a = [jnp.dot(wv_ref[1], a_ref[j], preferred_element_type=jnp.float32)
           + bv_ref[1] for j in range(B)]

    def softmax_weights(direction):
        base = direction * B * B
        rows = []
        for i in range(B):
            lg = [logits_ref[base + i * B + j: base + i * B + j + 1, 0:1]
                  for j in range(B)]
            m = lg[0]
            for j in range(1, B):
                m = jnp.maximum(m, lg[j])
            ex = [jnp.exp(l - m) for l in lg]
            den = ex[0]
            for j in range(1, B):
                den = den + ex[j]
            inv = pl.reciprocal(den, approx=True)
            rows.append([e * inv for e in ex])
        return rows

    attn_ab = softmax_weights(0)
    attn_ba = softmax_weights(1)

    for i in range(B):
        acc = attn_ab[i][0] * v_b[0]
        for j in range(1, B):
            acc = acc + attn_ab[i][j] * v_b[j]
        oab_ref[i] = acc.astype(oab_ref.dtype)

        acc = attn_ba[i][0] * v_a[0]
        for j in range(1, B):
            acc = acc + attn_ba[i][j] * v_a[j]
        oba_ref[i] = acc.astype(oba_ref.dtype)


def cross_attention_3d(input_a, input_b, weights, biases, *, max_tile_s=512):
    """input_a, input_b: (B, C, D, H, W) float32 (NCDHW, like PyTorch)."""
    B, C, D, H, W = input_a.shape
    S = D * H * W

    tile_s = min(max_tile_s, _round_up(S, _LANE))
    s_pad = _round_up(S, tile_s)
    num_tiles = s_pad // tile_s

    a = input_a.reshape(B, C, S).astype(jnp.float32)
    b = input_b.reshape(B, C, S).astype(jnp.float32)
    if s_pad != S:
        a = jnp.pad(a, ((0, 0), (0, 0), (0, s_pad - S)))
        b = jnp.pad(b, ((0, 0), (0, 0), (0, s_pad - S)))

    w_qa, w_kb, w_vb, w_qb, w_ka, w_va = [w.astype(jnp.float32) for w in weights]
    b_qa, b_kb, b_vb, b_qb, b_ka, b_va = [
        x.astype(jnp.float32).reshape(C, 1) for x in biases]

    wa_qk = jnp.concatenate([w_qa, w_ka], axis=0)      # (2C, C), applied to a
    ba_qk = jnp.concatenate([b_qa, b_ka], axis=0)      # (2C, 1)
    wb_qk = jnp.concatenate([w_kb, w_qb], axis=0)      # (2C, C), applied to b
    bb_qk = jnp.concatenate([b_kb, b_qb], axis=0)      # (2C, 1)
    wv = jnp.stack([w_vb, w_va])                       # (2, C, C)
    bv = jnp.stack([b_vb, b_va])                       # (2, C, 1)

    n_rows = 2 * B * B
    tile_bytes = B * C * tile_s * 4
    vmem_limit = int(min(32 * 1024 * 1024, max(16 * 1024 * 1024, 32 * tile_bytes)))

    tile_spec = pl.BlockSpec((B, C, tile_s), lambda t: (0, 0, t))

    # ---- pass 1: accumulate the BxB logit matrices over the spatial tiles ----
    logits = pl.pallas_call(
        _logits_kernel,
        out_shape=jax.ShapeDtypeStruct((n_rows, _LANE), jnp.float32),
        grid=(num_tiles,),
        in_specs=[
            tile_spec,
            tile_spec,
            pl.BlockSpec((2 * C, C), lambda t: (0, 0)),
            pl.BlockSpec((2 * C, 1), lambda t: (0, 0)),
            pl.BlockSpec((2 * C, C), lambda t: (0, 0)),
            pl.BlockSpec((2 * C, 1), lambda t: (0, 0)),
        ],
        out_specs=pl.BlockSpec((n_rows, _LANE), lambda t: (0, 0)),
        compiler_params=pltpu.CompilerParams(
            dimension_semantics=("arbitrary",),
            vmem_limit_bytes=vmem_limit),
        cost_estimate=pl.CostEstimate(
            flops=int(8 * B * C * C * s_pad + 4 * B * B * C * s_pad),
            transcendentals=0,
            bytes_accessed=int(2 * B * C * s_pad * 4 + n_rows * _LANE * 4)),
    )(a, b, wa_qk, ba_qk, wb_qk, bb_qk)

    # ---- pass 2: value projection + softmax-weighted mixing (tile-parallel) ----
    out_ab, out_ba = pl.pallas_call(
        _output_kernel,
        out_shape=(
            jax.ShapeDtypeStruct((B, C, s_pad), jnp.float32),
            jax.ShapeDtypeStruct((B, C, s_pad), jnp.float32),
        ),
        grid=(num_tiles,),
        in_specs=[
            pl.BlockSpec((n_rows, _LANE), lambda t: (0, 0)),
            tile_spec,
            tile_spec,
            pl.BlockSpec((2, C, C), lambda t: (0, 0, 0)),
            pl.BlockSpec((2, C, 1), lambda t: (0, 0, 0)),
        ],
        out_specs=(tile_spec, tile_spec),
        compiler_params=pltpu.CompilerParams(
            dimension_semantics=("parallel",),
            vmem_limit_bytes=vmem_limit),
        cost_estimate=pl.CostEstimate(
            flops=int(4 * B * C * C * s_pad + 4 * B * B * C * s_pad),
            transcendentals=int(2 * B * B * num_tiles),
            bytes_accessed=int(4 * B * C * s_pad * 4)),
    )(logits, a, b, wv, bv)

    out_ab = out_ab[:, :, :S].reshape(B, C, D, H, W)
    out_ba = out_ba[:, :, :S].reshape(B, C, D, H, W)
    return out_ab, out_ba


def reference(input_a, input_b, weights, biases):
    """Pure-JAX reference mirroring the PyTorch forward exactly (NCDHW flatten order)."""
    B = input_a.shape[0]

    def conv(x, w, b):
        return jnp.einsum("oc,bcdhw->bodhw", w, x) + b[None, :, None, None, None]

    q_a = conv(input_a, weights[0], biases[0])
    k_b = conv(input_b, weights[1], biases[1])
    v_b = conv(input_b, weights[2], biases[2])
    q_b = conv(input_b, weights[3], biases[3])
    k_a = conv(input_a, weights[4], biases[4])
    v_a = conv(input_a, weights[5], biases[5])

    def attend(q, k, v):
        qf = q.reshape(B, -1)
        kf = k.reshape(B, -1)
        vf = v.reshape(B, -1)
        attn = jax.nn.softmax(qf @ kf.T, axis=-1)
        return (attn @ vf).reshape(v.shape)

    return attend(q_a, k_b, v_b), attend(q_b, k_a, v_a)


if __name__ == "__main__":
    key = jax.random.PRNGKey(0)
    keys = jax.random.split(key, 14)

    def run_case(shape):
        B, C, D, H, W = shape
        weights = [0.05 * jax.random.normal(keys[i], (C, C), jnp.float32)
                   for i in range(6)]
        biases = [0.05 * jax.random.normal(keys[6 + i], (C,), jnp.float32)
                  for i in range(6)]
        input_a = jax.random.normal(keys[12], shape, jnp.float32)
        input_b = jax.random.normal(keys[13], shape, jnp.float32)

        out_ab, out_ba = jax.jit(cross_attention_3d)(input_a, input_b, weights, biases)
        out_ab = jax.block_until_ready(out_ab)
        out_ba = jax.block_until_ready(out_ba)

        ref_ab, ref_ba = reference(input_a, input_b, weights, biases)
        np.testing.assert_allclose(np.asarray(out_ab), np.asarray(ref_ab),
                                   rtol=5e-2, atol=2e-3)
        np.testing.assert_allclose(np.asarray(out_ba), np.asarray(ref_ba),
                                   rtol=5e-2, atol=2e-3)
        assert out_ab.dtype == jnp.float32 and out_ba.dtype == jnp.float32
        assert out_ab.shape == shape and out_ba.shape == shape

    # multi-tile, lane-aligned case: S = 4*16*16 = 1024 -> 2 tiles of 512 lanes
    run_case((2, 8, 4, 16, 16))
    # unaligned spatial size: S = 3*5*7 = 105 -> zero-padded to one 128-lane tile
    run_case((2, 8, 3, 5, 7))

    print("KERNEL_OK")
</pallas_src>

<mosaic_0001>
module attributes {stable_mosaic.version = 11 : i64} {
  func.func @_logits_kernel(%arg0: i32, %arg1: memref<2x8x512xf32, #tpu.memory_space<vmem>>, %arg2: memref<2x8x512xf32, #tpu.memory_space<vmem>>, %arg3: memref<16x8xf32, #tpu.memory_space<vmem>>, %arg4: memref<16x1xf32, #tpu.memory_space<vmem>>, %arg5: memref<16x8xf32, #tpu.memory_space<vmem>>, %arg6: memref<16x1xf32, #tpu.memory_space<vmem>>, %arg7: memref<8x128xf32, #tpu.memory_space<vmem>>) attributes {dimension_semantics = [#tpu.dimension_semantics<arbitrary>], iteration_bounds = array<i64: 2>, scalar_prefetch = 0 : i64, scratch_operands = 0 : i64, tpu.core_type = #tpu.core_type<tc>, window_params = [{transform_indices = @transform_0, window_bounds = array<i64: 2, 8, 512>}, {transform_indices = @transform_1, window_bounds = array<i64: 2, 8, 512>}, {pipeline_mode = #tpu.pipeline_mode<synchronous>, transform_indices = @transform_2, window_bounds = array<i64: 16, 8>}, {pipeline_mode = #tpu.pipeline_mode<synchronous>, transform_indices = @transform_3, window_bounds = array<i64: 16, 1>}, {pipeline_mode = #tpu.pipeline_mode<synchronous>, transform_indices = @transform_4, window_bounds = array<i64: 16, 8>}, {pipeline_mode = #tpu.pipeline_mode<synchronous>, transform_indices = @transform_5, window_bounds = array<i64: 16, 1>}, {pipeline_mode = #tpu.pipeline_mode<synchronous>, transform_indices = @transform_6, window_bounds = array<i64: 8, 128>}]} {
    %c0_i32 = arith.constant 0 : i32
    %0 = arith.cmpi eq, %arg0, %c0_i32 : i32
    %1 = arith.extui %0 : i1 to i32
    %c0_i32_0 = arith.constant 0 : i32
    %2 = arith.cmpi ne, %1, %c0_i32_0 : i32
    scf.if %2 {
      %cst_64 = arith.constant 0.000000e+00 : f32
      %119 = vector.broadcast %cst_64 : f32 to vector<8x128xf32>
      %c0_65 = arith.constant 0 : index
      %c0_66 = arith.constant 0 : index
      %120 = vector.load %arg7[%c0_65, %c0_66] : memref<8x128xf32, #tpu.memory_space<vmem>>, vector<8x128xf32>
      tpu.vector_store %arg7[%c0_65, %c0_66], %119 {strides = array<i32>} : memref<8x128xf32, #tpu.memory_space<vmem>>, vector<8x128xf32>,
    } else {
    }
    %c0 = arith.constant 0 : index
    %c0_1 = arith.constant 0 : index
    %3 = vector.load %arg3[%c0, %c0_1] : memref<16x8xf32, #tpu.memory_space<vmem>>, vector<16x8xf32>
    %c0_2 = arith.constant 0 : index
    %c0_3 = arith.constant 0 : index
    %c0_4 = arith.constant 0 : index
    %4 = vector.load %arg1[%c0_2, %c0_3, %c0_4] : memref<2x8x512xf32, #tpu.memory_space<vmem>>, vector<1x8x512xf32>
    %5 = vector.shape_cast %4 : vector<1x8x512xf32> to vector<8x512xf32>
    %cst = arith.constant dense<0.000000e+00> : vector<16x512xf32>
    %6 = tpu.matmul %3, %5, %cst {dimension_numbers = #tpu.dot_dimension_numbers<[1], [0], [0], [1], [0, 0, 1, 1], [], []>} : vector<16x8xf32>, vector<8x512xf32>, vector<16x512xf32> -> vector<16x512xf32>
    %c0_5 = arith.constant 0 : index
    %c0_6 = arith.constant 0 : index
    %7 = vector.load %arg4[%c0_5, %c0_6] : memref<16x1xf32, #tpu.memory_space<vmem>>, vector<16x1xf32>
    %8 = vector.broadcast %7 : vector<16x1xf32> to vector<16x512xf32>
    %9 = arith.addf %6, %8 : vector<16x512xf32>
    %c0_7 = arith.constant 0 : index
    %c0_8 = arith.constant 0 : index
    %10 = vector.load %arg5[%c0_7, %c0_8] : memref<16x8xf32, #tpu.memory_space<vmem>>, vector<16x8xf32>
    %c0_9 = arith.constant 0 : index
    %c0_10 = arith.constant 0 : index
    %c0_11 = arith.constant 0 : index
    %11 = vector.load %arg2[%c0_9, %c0_10, %c0_11] : memref<2x8x512xf32, #tpu.memory_space<vmem>>, vector<1x8x512xf32>
    %12 = vector.shape_cast %11 : vector<1x8x512xf32> to vector<8x512xf32>
    %cst_12 = arith.constant dense<0.000000e+00> : vector<16x512xf32>
    %13 = tpu.matmul %10, %12, %cst_12 {dimension_numbers = #tpu.dot_dimension_numbers<[1], [0], [0], [1], [0, 0, 1, 1], [], []>} : vector<16x8xf32>, vector<8x512xf32>, vector<16x512xf32> -> vector<16x512xf32>
    %c0_13 = arith.constant 0 : index
    %c0_14 = arith.constant 0 : index
    %14 = vector.load %arg6[%c0_13, %c0_14] : memref<16x1xf32, #tpu.memory_space<vmem>>, vector<16x1xf32>
    %15 = vector.broadcast %14 : vector<16x1xf32> to vector<16x512xf32>
    %16 = arith.addf %13, %15 : vector<16x512xf32>
    %17 = vector.extract_strided_slice %9 {offsets = [0, 0], sizes = [8, 512], strides = [1, 1]} : vector<16x512xf32> to vector<8x512xf32>
    %18 = vector.extract_strided_slice %9 {offsets = [8, 0], sizes = [8, 512], strides = [1, 1]} : vector<16x512xf32> to vector<8x512xf32>
    %19 = vector.extract_strided_slice %16 {offsets = [0, 0], sizes = [8, 512], strides = [1, 1]} : vector<16x512xf32> to vector<8x512xf32>
    %20 = vector.extract_strided_slice %16 {offsets = [8, 0], sizes = [8, 512], strides = [1, 1]} : vector<16x512xf32> to vector<8x512xf32>
    %c0_15 = arith.constant 0 : index
    %c0_16 = arith.constant 0 : index
    %21 = vector.load %arg3[%c0_15, %c0_16] : memref<16x8xf32, #tpu.memory_space<vmem>>, vector<16x8xf32>
    %c1 = arith.constant 1 : index
    %c0_17 = arith.constant 0 : index
    %c0_18 = arith.constant 0 : index
    %22 = vector.load %arg1[%c1, %c0_17, %c0_18] : memref<2x8x512xf32, #tpu.memory_space<vmem>>, vector<1x8x512xf32>
    %23 = vector.shape_cast %22 : vector<1x8x512xf32> to vector<8x512xf32>
    %cst_19 = arith.constant dense<0.000000e+00> : vector<16x512xf32>
    %24 = tpu.matmul %21, %23, %cst_19 {dimension_numbers = #tpu.dot_dimension_numbers<[1], [0], [0], [1], [0, 0, 1, 1], [], []>} : vector<16x8xf32>, vector<8x512xf32>, vector<16x512xf32> -> vector<16x512xf32>
    %c0_20 = arith.constant 0 : index
    %c0_21 = arith.constant 0 : index
    %25 = vector.load %arg4[%c0_20, %c0_21] : memref<16x1xf32, #tpu.memory_space<vmem>>, vector<16x1xf32>
    %26 = vector.broadcast %25 : vector<16x1xf32> to vector<16x512xf32>
    %27 = arith.addf %24, %26 : vector<16x512xf32>
    %c0_22 = arith.constant 0 : index
    %c0_23 = arith.constant 0 : index
    %28 = vector.load %arg5[%c0_22, %c0_23] : memref<16x8xf32, #tpu.memory_space<vmem>>, vector<16x8xf32>
    %c1_24 = arith.constant 1 : index
    %c0_25 = arith.constant 0 : index
    %c0_26 = arith.constant 0 : index
    %29 = vector.load %arg2[%c1_24, %c0_25, %c0_26] : memref<2x8x512xf32, #tpu.memory_space<vmem>>, vector<1x8x512xf32>
    %30 = vector.shape_cast %29 : vector<1x8x512xf32> to vector<8x512xf32>
    %cst_27 = arith.constant dense<0.000000e+00> : vector<16x512xf32>
    %31 = tpu.matmul %28, %30, %cst_27 {dimension_numbers = #tpu.dot_dimension_numbers<[1], [0], [0], [1], [0, 0, 1, 1], [], []>} : vector<16x8xf32>, vector<8x512xf32>, vector<16x512xf32> -> vector<16x512xf32>
    %c0_28 = arith.constant 0 : index
    %c0_29 = arith.constant 0 : index
    %32 = vector.load %arg6[%c0_28, %c0_29] : memref<16x1xf32, #tpu.memory_space<vmem>>, vector<16x1xf32>
    %33 = vector.broadcast %32 : vector<16x1xf32> to vector<16x512xf32>
    %34 = arith.addf %31, %33 : vector<16x512xf32>
    %35 = vector.extract_strided_slice %27 {offsets = [0, 0], sizes = [8, 512], strides = [1, 1]} : vector<16x512xf32> to vector<8x512xf32>
    %36 = vector.extract_strided_slice %27 {offsets = [8, 0], sizes = [8, 512], strides = [1, 1]} : vector<16x512xf32> to vector<8x512xf32>
    %37 = vector.extract_strided_slice %34 {offsets = [0, 0], sizes = [8, 512], strides = [1, 1]} : vector<16x512xf32> to vector<8x512xf32>
    %38 = vector.extract_strided_slice %34 {offsets = [8, 0], sizes = [8, 512], strides = [1, 1]} : vector<16x512xf32> to vector<8x512xf32>
    %39 = arith.mulf %17, %19 : vector<8x512xf32>
    %40 = vector.shape_cast %39 : vector<8x512xf32> to vector<1x8x512xf32>
    %cst_30 = arith.constant dense<0.000000e+00> : vector<1xf32>
    %41 = vector.multi_reduction <add>, %40, %cst_30 [1, 2] : vector<1x8x512xf32> to vector<1xf32>
    %42 = vector.shape_cast %41 : vector<1xf32> to vector<1x1x1xf32>
    %43 = vector.extract %42[0, 0, 0] : f32 from vector<1x1x1xf32>
    %44 = vector.broadcast %43 : f32 to vector<1x1xf32>
    %45 = arith.mulf %20, %18 : vector<8x512xf32>
    %46 = vector.shape_cast %45 : vector<8x512xf32> to vector<1x8x512xf32>
    %cst_31 = arith.constant dense<0.000000e+00> : vector<1xf32>
    %47 = vector.multi_reduction <add>, %46, %cst_31 [1, 2] : vector<1x8x512xf32> to vector<1xf32>
    %48 = vector.shape_cast %47 : vector<1xf32> to vector<1x1x1xf32>
    %49 = vector.extract %48[0, 0, 0] : f32 from vector<1x1x1xf32>
    %50 = vector.broadcast %49 : f32 to vector<1x1xf32>
    %c0_32 = arith.constant 0 : index
    %c0_33 = arith.constant 0 : index
    %51 = vector.load %arg7[%c0_32, %c0_33] : memref<8x128xf32, #tpu.memory_space<vmem>>, vector<1x128xf32>
    %52 = vector.broadcast %44 : vector<1x1xf32> to vector<1x128xf32>
    %53 = arith.addf %51, %52 : vector<1x128xf32>
    %c0_34 = arith.constant 0 : index
    %c0_35 = arith.constant 0 : index
    %54 = vector.load %arg7[%c0_34, %c0_35] : memref<8x128xf32, #tpu.memory_space<vmem>>, vector<1x128xf32>
    tpu.vector_store %arg7[%c0_34, %c0_35], %53 {strides = array<i32>} : memref<8x128xf32, #tpu.memory_space<vmem>>, vector<1x128xf32>,
    %c4 = arith.constant 4 : index
    %c0_36 = arith.constant 0 : index
    %55 = vector.load %arg7[%c4, %c0_36] : memref<8x128xf32, #tpu.memory_space<vmem>>, vector<1x128xf32>
    %56 = vector.broadcast %50 : vector<1x1xf32> to vector<1x128xf32>
    %57 = arith.addf %55, %56 : vector<1x128xf32>
    %c4_37 = arith.constant 4 : index
    %c0_38 = arith.constant 0 : index
    %58 = vector.load %arg7[%c4_37, %c0_38] : memref<8x128xf32, #tpu.memory_space<vmem>>, vector<1x128xf32>
    tpu.vector_store %arg7[%c4_37, %c0_38], %57 {strides = array<i32>} : memref<8x128xf32, #tpu.memory_space<vmem>>, vector<1x128xf32>,
    %59 = arith.mulf %17, %37 : vector<8x512xf32>
    %60 = vector.shape_cast %59 : vector<8x512xf32> to vector<1x8x512xf32>
    %cst_39 = arith.constant dense<0.000000e+00> : vector<1xf32>
    %61 = vector.multi_reduction <add>, %60, %cst_39 [1, 2] : vector<1x8x512xf32> to vector<1xf32>
    %62 = vector.shape_cast %61 : vector<1xf32> to vector<1x1x1xf32>
    %63 = vector.extract %62[0, 0, 0] : f32 from vector<1x1x1xf32>
    %64 = vector.broadcast %63 : f32 to vector<1x1xf32>
    %65 = arith.mulf %20, %36 : vector<8x512xf32>
    %66 = vector.shape_cast %65 : vector<8x512xf32> to vector<1x8x512xf32>
    %cst_40 = arith.constant dense<0.000000e+00> : vector<1xf32>
    %67 = vector.multi_reduction <add>, %66, %cst_40 [1, 2] : vector<1x8x512xf32> to vector<1xf32>
    %68 = vector.shape_cast %67 : vector<1xf32> to vector<1x1x1xf32>
    %69 = vector.extract %68[0, 0, 0] : f32 from vector<1x1x1xf32>
    %70 = vector.broadcast %69 : f32 to vector<1x1xf32>
    %c1_41 = arith.constant 1 : index
    %c0_42 = arith.constant 0 : index
    %71 = vector.load %arg7[%c1_41, %c0_42] : memref<8x128xf32, #tpu.memory_space<vmem>>, vector<1x128xf32>
    %72 = vector.broadcast %64 : vector<1x1xf32> to vector<1x128xf32>
    %73 = arith.addf %71, %72 : vector<1x128xf32>
    %c1_43 = arith.constant 1 : index
    %c0_44 = arith.constant 0 : index
    %74 = vector.load %arg7[%c1_43, %c0_44] : memref<8x128xf32, #tpu.memory_space<vmem>>, vector<1x128xf32>
    tpu.vector_store %arg7[%c1_43, %c0_44], %73 {strides = array<i32>} : memref<8x128xf32, #tpu.memory_space<vmem>>, vector<1x128xf32>,
    %c5 = arith.constant 5 : index
    %c0_45 = arith.constant 0 : index
    %75 = vector.load %arg7[%c5, %c0_45] : memref<8x128xf32, #tpu.memory_space<vmem>>, vector<1x128xf32>
    %76 = vector.broadcast %70 : vector<1x1xf32> to vector<1x128xf32>
    %77 = arith.addf %75, %76 : vector<1x128xf32>
    %c5_46 = arith.constant 5 : index
    %c0_47 = arith.constant 0 : index
    %78 = vector.load %arg7[%c5_46, %c0_47] : memref<8x128xf32, #tpu.memory_space<vmem>>, vector<1x128xf32>
    tpu.vector_store %arg7[%c5_46, %c0_47], %77 {strides = array<i32>} : memref<8x128xf32, #tpu.memory_space<vmem>>, vector<1x128xf32>,
    %79 = arith.mulf %35, %19 : vector<8x512xf32>
    %80 = vector.shape_cast %79 : vector<8x512xf32> to vector<1x8x512xf32>
    %cst_48 = arith.constant dense<0.000000e+00> : vector<1xf32>
    %81 = vector.multi_reduction <add>, %80, %cst_48 [1, 2] : vector<1x8x512xf32> to vector<1xf32>
    %82 = vector.shape_cast %81 : vector<1xf32> to vector<1x1x1xf32>
    %83 = vector.extract %82[0, 0, 0] : f32 from vector<1x1x1xf32>
    %84 = vector.broadcast %83 : f32 to vector<1x1xf32>
    %85 = arith.mulf %38, %18 : vector<8x512xf32>
    %86 = vector.shape_cast %85 : vector<8x512xf32> to vector<1x8x512xf32>
    %cst_49 = arith.constant dense<0.000000e+00> : vector<1xf32>
    %87 = vector.multi_reduction <add>, %86, %cst_49 [1, 2] : vector<1x8x512xf32> to vector<1xf32>
    %88 = vector.shape_cast %87 : vector<1xf32> to vector<1x1x1xf32>
    %89 = vector.extract %88[0, 0, 0] : f32 from vector<1x1x1xf32>
    %90 = vector.broadcast %89 : f32 to vector<1x1xf32>
    %c2 = arith.constant 2 : index
    %c0_50 = arith.constant 0 : index
    %91 = vector.load %arg7[%c2, %c0_50] : memref<8x128xf32, #tpu.memory_space<vmem>>, vector<1x128xf32>
    %92 = vector.broadcast %84 : vector<1x1xf32> to vector<1x128xf32>
    %93 = arith.addf %91, %92 : vector<1x128xf32>
    %c2_51 = arith.constant 2 : index
    %c0_52 = arith.constant 0 : index
    %94 = vector.load %arg7[%c2_51, %c0_52] : memref<8x128xf32, #tpu.memory_space<vmem>>, vector<1x128xf32>
    tpu.vector_store %arg7[%c2_51, %c0_52], %93 {strides = array<i32>} : memref<8x128xf32, #tpu.memory_space<vmem>>, vector<1x128xf32>,
    %c6 = arith.constant 6 : index
    %c0_53 = arith.constant 0 : index
    %95 = vector.load %arg7[%c6, %c0_53] : memref<8x128xf32, #tpu.memory_space<vmem>>, vector<1x128xf32>
    %96 = vector.broadcast %90 : vector<1x1xf32> to vector<1x128xf32>
    %97 = arith.addf %95, %96 : vector<1x128xf32>
    %c6_54 = arith.constant 6 : index
    %c0_55 = arith.constant 0 : index
    %98 = vector.load %arg7[%c6_54, %c0_55] : memref<8x128xf32, #tpu.memory_space<vmem>>, vector<1x128xf32>
    tpu.vector_store %arg7[%c6_54, %c0_55], %97 {strides = array<i32>} : memref<8x128xf32, #tpu.memory_space<vmem>>, vector<1x128xf32>,
    %99 = arith.mulf %35, %37 : vector<8x512xf32>
    %100 = vector.shape_cast %99 : vector<8x512xf32> to vector<1x8x512xf32>
    %cst_56 = arith.constant dense<0.000000e+00> : vector<1xf32>
    %101 = vector.multi_reduction <add>, %100, %cst_56 [1, 2] : vector<1x8x512xf32> to vector<1xf32>
    %102 = vector.shape_cast %101 : vector<1xf32> to vector<1x1x1xf32>
    %103 = vector.extract %102[0, 0, 0] : f32 from vector<1x1x1xf32>
    %104 = vector.broadcast %103 : f32 to vector<1x1xf32>
    %105 = arith.mulf %38, %36 : vector<8x512xf32>
    %106 = vector.shape_cast %105 : vector<8x512xf32> to vector<1x8x512xf32>
    %cst_57 = arith.constant dense<0.000000e+00> : vector<1xf32>
    %107 = vector.multi_reduction <add>, %106, %cst_57 [1, 2] : vector<1x8x512xf32> to vector<1xf32>
    %108 = vector.shape_cast %107 : vector<1xf32> to vector<1x1x1xf32>
    %109 = vector.extract %108[0, 0, 0] : f32 from vector<1x1x1xf32>
    %110 = vector.broadcast %109 : f32 to vector<1x1xf32>
    %c3 = arith.constant 3 : index
    %c0_58 = arith.constant 0 : index
    %111 = vector.load %arg7[%c3, %c0_58] : memref<8x128xf32, #tpu.memory_space<vmem>>, vector<1x128xf32>
    %112 = vector.broadcast %104 : vector<1x1xf32> to vector<1x128xf32>
    %113 = arith.addf %111, %112 : vector<1x128xf32>
    %c3_59 = arith.constant 3 : index
    %c0_60 = arith.constant 0 : index
    %114 = vector.load %arg7[%c3_59, %c0_60] : memref<8x128xf32, #tpu.memory_space<vmem>>, vector<1x128xf32>
    tpu.vector_store %arg7[%c3_59, %c0_60], %113 {strides = array<i32>} : memref<8x128xf32, #tpu.memory_space<vmem>>, vector<1x128xf32>,
    %c7 = arith.constant 7 : index
    %c0_61 = arith.constant 0 : index
    %115 = vector.load %arg7[%c7, %c0_61] : memref<8x128xf32, #tpu.memory_space<vmem>>, vector<1x128xf32>
    %116 = vector.broadcast %110 : vector<1x1xf32> to vector<1x128xf32>
    %117 = arith.addf %115, %116 : vector<1x128xf32>
    %c7_62 = arith.constant 7 : index
    %c0_63 = arith.constant 0 : index
    %118 = vector.load %arg7[%c7_62, %c0_63] : memref<8x128xf32, #tpu.memory_space<vmem>>, vector<1x128xf32>
    tpu.vector_store %arg7[%c7_62, %c0_63], %117 {strides = array<i32>} : memref<8x128xf32, #tpu.memory_space<vmem>>, vector<1x128xf32>,
    return
  }
  func.func @transform_0(%arg0: i32) -> (i32, i32, i32) {
    %c0_i32 = arith.constant 0 : i32
    %c0_i32_0 = arith.constant 0 : i32
    %c0_i32_1 = arith.constant 0 : i32
    return %c0_i32, %c0_i32_0, %arg0 : i32, i32, i32
  }
  func.func @transform_1(%arg0: i32) -> (i32, i32, i32) {
    %c0_i32 = arith.constant 0 : i32
    %c0_i32_0 = arith.constant 0 : i32
    %c0_i32_1 = arith.constant 0 : i32
    return %c0_i32, %c0_i32_0, %arg0 : i32, i32, i32
  }
  func.func @transform_2(%arg0: i32) -> (i32, i32) {
    %c0_i32 = arith.constant 0 : i32
    %c0_i32_0 = arith.constant 0 : i32
    %c0_i32_1 = arith.constant 0 : i32
    return %c0_i32, %c0_i32_0 : i32, i32
  }
  func.func @transform_3(%arg0: i32) -> (i32, i32) {
    %c0_i32 = arith.constant 0 : i32
    %c0_i32_0 = arith.constant 0 : i32
    %c0_i32_1 = arith.constant 0 : i32
    return %c0_i32, %c0_i32_0 : i32, i32
  }
  func.func @transform_4(%arg0: i32) -> (i32, i32) {
    %c0_i32 = arith.constant 0 : i32
    %c0_i32_0 = arith.constant 0 : i32
    %c0_i32_1 = arith.constant 0 : i32
    return %c0_i32, %c0_i32_0 : i32, i32
  }
  func.func @transform_5(%arg0: i32) -> (i32, i32) {
    %c0_i32 = arith.constant 0 : i32
    %c0_i32_0 = arith.constant 0 : i32
    %c0_i32_1 = arith.constant 0 : i32
    return %c0_i32, %c0_i32_0 : i32, i32
  }
  func.func @transform_6(%arg0: i32) -> (i32, i32) {
    %c0_i32 = arith.constant 0 : i32
    %c0_i32_0 = arith.constant 0 : i32
    %c0_i32_1 = arith.constant 0 : i32
    return %c0_i32, %c0_i32_0 : i32, i32
  }
}

module attributes {stable_mosaic.version = 11 : i64} {
  func.func @_output_kernel(%arg0: i32, %arg1: memref<8x128xf32, #tpu.memory_space<vmem>>, %arg2: memref<2x8x512xf32, #tpu.memory_space<vmem>>, %arg3: memref<2x8x512xf32, #tpu.memory_space<vmem>>, %arg4: memref<2x8x8xf32, #tpu.memory_space<vmem>>, %arg5: memref<2x8x1xf32, #tpu.memory_space<vmem>>, %arg6: memref<2x8x512xf32, #tpu.memory_space<vmem>>, %arg7: memref<2x8x512xf32, #tpu.memory_space<vmem>>) attributes {dimension_semantics = [#tpu.dimension_semantics<parallel>], iteration_bounds = array<i64: 2>, scalar_prefetch = 0 : i64, scratch_operands = 0 : i64, tpu.core_type = #tpu.core_type<tc>, window_params = [{pipeline_mode = #tpu.pipeline_mode<synchronous>, transform_indices = @transform_0, window_bounds = array<i64: 8, 128>}, {transform_indices = @transform_1, window_bounds = array<i64: 2, 8, 512>}, {transform_indices = @transform_2, window_bounds = array<i64: 2, 8, 512>}, {pipeline_mode = #tpu.pipeline_mode<synchronous>, transform_indices = @transform_3, window_bounds = array<i64: 2, 8, 8>}, {pipeline_mode = #tpu.pipeline_mode<synchronous>, transform_indices = @transform_4, window_bounds = array<i64: 2, 8, 1>}, {transform_indices = @transform_5, window_bounds = array<i64: 2, 8, 512>}, {transform_indices = @transform_6, window_bounds = array<i64: 2, 8, 512>}]} {
    %c0 = arith.constant 0 : index
    %c0_0 = arith.constant 0 : index
    %c0_1 = arith.constant 0 : index
    %0 = vector.load %arg4[%c0, %c0_0, %c0_1] : memref<2x8x8xf32, #tpu.memory_space<vmem>>, vector<1x8x8xf32>
    %1 = vector.shape_cast %0 : vector<1x8x8xf32> to vector<8x8xf32>
    %c0_2 = arith.constant 0 : index
    %c0_3 = arith.constant 0 : index
    %c0_4 = arith.constant 0 : index
    %2 = vector.load %arg3[%c0_2, %c0_3, %c0_4] : memref<2x8x512xf32, #tpu.memory_space<vmem>>, vector<1x8x512xf32>
    %3 = vector.shape_cast %2 : vector<1x8x512xf32> to vector<8x512xf32>
    %cst = arith.constant dense<0.000000e+00> : vector<8x512xf32>
    %4 = tpu.matmul %1, %3, %cst {dimension_numbers = #tpu.dot_dimension_numbers<[1], [0], [0], [1], [0, 0, 1, 1], [], []>} : vector<8x8xf32>, vector<8x512xf32>, vector<8x512xf32> -> vector<8x512xf32>
    %c0_5 = arith.constant 0 : index
    %c0_6 = arith.constant 0 : index
    %c0_7 = arith.constant 0 : index
    %5 = vector.load %arg5[%c0_5, %c0_6, %c0_7] : memref<2x8x1xf32, #tpu.memory_space<vmem>>, vector<1x8x1xf32>
    %6 = vector.shape_cast %5 : vector<1x8x1xf32> to vector<8x1xf32>
    %7 = vector.broadcast %6 : vector<8x1xf32> to vector<8x512xf32>
    %8 = arith.addf %4, %7 : vector<8x512xf32>
    %c0_8 = arith.constant 0 : index
    %c0_9 = arith.constant 0 : index
    %c0_10 = arith.constant 0 : index
    %9 = vector.load %arg4[%c0_8, %c0_9, %c0_10] : memref<2x8x8xf32, #tpu.memory_space<vmem>>, vector<1x8x8xf32>
    %10 = vector.shape_cast %9 : vector<1x8x8xf32> to vector<8x8xf32>
    %c1 = arith.constant 1 : index
    %c0_11 = arith.constant 0 : index
    %c0_12 = arith.constant 0 : index
    %11 = vector.load %arg3[%c1, %c0_11, %c0_12] : memref<2x8x512xf32, #tpu.memory_space<vmem>>, vector<1x8x512xf32>
    %12 = vector.shape_cast %11 : vector<1x8x512xf32> to vector<8x512xf32>
    %cst_13 = arith.constant dense<0.000000e+00> : vector<8x512xf32>
    %13 = tpu.matmul %10, %12, %cst_13 {dimension_numbers = #tpu.dot_dimension_numbers<[1], [0], [0], [1], [0, 0, 1, 1], [], []>} : vector<8x8xf32>, vector<8x512xf32>, vector<8x512xf32> -> vector<8x512xf32>
    %c0_14 = arith.constant 0 : index
    %c0_15 = arith.constant 0 : index
    %c0_16 = arith.constant 0 : index
    %14 = vector.load %arg5[%c0_14, %c0_15, %c0_16] : memref<2x8x1xf32, #tpu.memory_space<vmem>>, vector<1x8x1xf32>
    %15 = vector.shape_cast %14 : vector<1x8x1xf32> to vector<8x1xf32>
    %16 = vector.broadcast %15 : vector<8x1xf32> to vector<8x512xf32>
    %17 = arith.addf %13, %16 : vector<8x512xf32>
    %c1_17 = arith.constant 1 : index
    %c0_18 = arith.constant 0 : index
    %c0_19 = arith.constant 0 : index
    %18 = vector.load %arg4[%c1_17, %c0_18, %c0_19] : memref<2x8x8xf32, #tpu.memory_space<vmem>>, vector<1x8x8xf32>
    %19 = vector.shape_cast %18 : vector<1x8x8xf32> to vector<8x8xf32>
    %c0_20 = arith.constant 0 : index
    %c0_21 = arith.constant 0 : index
    %c0_22 = arith.constant 0 : index
    %20 = vector.load %arg2[%c0_20, %c0_21, %c0_22] : memref<2x8x512xf32, #tpu.memory_space<vmem>>, vector<1x8x512xf32>
    %21 = vector.shape_cast %20 : vector<1x8x512xf32> to vector<8x512xf32>
    %cst_23 = arith.constant dense<0.000000e+00> : vector<8x512xf32>
    %22 = tpu.matmul %19, %21, %cst_23 {dimension_numbers = #tpu.dot_dimension_numbers<[1], [0], [0], [1], [0, 0, 1, 1], [], []>} : vector<8x8xf32>, vector<8x512xf32>, vector<8x512xf32> -> vector<8x512xf32>
    %c1_24 = arith.constant 1 : index
    %c0_25 = arith.constant 0 : index
    %c0_26 = arith.constant 0 : index
    %23 = vector.load %arg5[%c1_24, %c0_25, %c0_26] : memref<2x8x1xf32, #tpu.memory_space<vmem>>, vector<1x8x1xf32>
    %24 = vector.shape_cast %23 : vector<1x8x1xf32> to vector<8x1xf32>
    %25 = vector.broadcast %24 : vector<8x1xf32> to vector<8x512xf32>
    %26 = arith.addf %22, %25 : vector<8x512xf32>
    %c1_27 = arith.constant 1 : index
    %c0_28 = arith.constant 0 : index
    %c0_29 = arith.constant 0 : index
    %27 = vector.load %arg4[%c1_27, %c0_28, %c0_29] : memref<2x8x8xf32, #tpu.memory_space<vmem>>, vector<1x8x8xf32>
    %28 = vector.shape_cast %27 : vector<1x8x8xf32> to vector<8x8xf32>
    %c1_30 = arith.constant 1 : index
    %c0_31 = arith.constant 0 : index
    %c0_32 = arith.constant 0 : index
    %29 = vector.load %arg2[%c1_30, %c0_31, %c0_32] : memref<2x8x512xf32, #tpu.memory_space<vmem>>, vector<1x8x512xf32>
    %30 = vector.shape_cast %29 : vector<1x8x512xf32> to vector<8x512xf32>
    %cst_33 = arith.constant dense<0.000000e+00> : vector<8x512xf32>
    %31 = tpu.matmul %28, %30, %cst_33 {dimension_numbers = #tpu.dot_dimension_numbers<[1], [0], [0], [1], [0, 0, 1, 1], [], []>} : vector<8x8xf32>, vector<8x512xf32>, vector<8x512xf32> -> vector<8x512xf32>
    %c1_34 = arith.constant 1 : index
    %c0_35 = arith.constant 0 : index
    %c0_36 = arith.constant 0 : index
    %32 = vector.load %arg5[%c1_34, %c0_35, %c0_36] : memref<2x8x1xf32, #tpu.memory_space<vmem>>, vector<1x8x1xf32>
    %33 = vector.shape_cast %32 : vector<1x8x1xf32> to vector<8x1xf32>
    %34 = vector.broadcast %33 : vector<8x1xf32> to vector<8x512xf32>
    %35 = arith.addf %31, %34 : vector<8x512xf32>
    %c0_37 = arith.constant 0 : index
    %c0_38 = arith.constant 0 : index
    %36 = vector.load %arg1[%c0_37, %c0_38] : memref<8x128xf32, #tpu.memory_space<vmem>>, vector<1x1xf32>
    %c1_39 = arith.constant 1 : index
    %c0_40 = arith.constant 0 : index
    %37 = vector.load %arg1[%c1_39, %c0_40] : memref<8x128xf32, #tpu.memory_space<vmem>>, vector<1x1xf32>
    %38 = arith.maximumf %36, %37 : vector<1x1xf32>
    %39 = arith.subf %36, %38 : vector<1x1xf32>
    %40 = math.exp %39 : vector<1x1xf32>
    %41 = arith.subf %37, %38 : vector<1x1xf32>
    %42 = math.exp %41 : vector<1x1xf32>
    %43 = arith.addf %40, %42 : vector<1x1xf32>
    %44 = tpu.reciprocal %43 {approx = true} : vector<1x1xf32> -> vector<1x1xf32>
    %45 = arith.mulf %40, %44 : vector<1x1xf32>
    %46 = arith.mulf %42, %44 : vector<1x1xf32>
    %c2 = arith.constant 2 : index
    %c0_41 = arith.constant 0 : index
    %47 = vector.load %arg1[%c2, %c0_41] : memref<8x128xf32, #tpu.memory_space<vmem>>, vector<1x1xf32>
    %c3 = arith.constant 3 : index
    %c0_42 = arith.constant 0 : index
    %48 = vector.load %arg1[%c3, %c0_42] : memref<8x128xf32, #tpu.memory_space<vmem>>, vector<1x1xf32>
    %49 = arith.maximumf %47, %48 : vector<1x1xf32>
    %50 = arith.subf %47, %49 : vector<1x1xf32>
    %51 = math.exp %50 : vector<1x1xf32>
    %52 = arith.subf %48, %49 : vector<1x1xf32>
    %53 = math.exp %52 : vector<1x1xf32>
    %54 = arith.addf %51, %53 : vector<1x1xf32>
    %55 = tpu.reciprocal %54 {approx = true} : vector<1x1xf32> -> vector<1x1xf32>
    %56 = arith.mulf %51, %55 : vector<1x1xf32>
    %57 = arith.mulf %53, %55 : vector<1x1xf32>
    %c4 = arith.constant 4 : index
    %c0_43 = arith.constant 0 : index
    %58 = vector.load %arg1[%c4, %c0_43] : memref<8x128xf32, #tpu.memory_space<vmem>>, vector<1x1xf32>
    %c5 = arith.constant 5 : index
    %c0_44 = arith.constant 0 : index
    %59 = vector.load %arg1[%c5, %c0_44] : memref<8x128xf32, #tpu.memory_space<vmem>>, vector<1x1xf32>
    %60 = arith.maximumf %58, %59 : vector<1x1xf32>
    %61 = arith.subf %58, %60 : vector<1x1xf32>
    %62 = math.exp %61 : vector<1x1xf32>
    %63 = arith.subf %59, %60 : vector<1x1xf32>
    %64 = math.exp %63 : vector<1x1xf32>
    %65 = arith.addf %62, %64 : vector<1x1xf32>
    %66 = tpu.reciprocal %65 {approx = true} : vector<1x1xf32> -> vector<1x1xf32>
    %67 = arith.mulf %62, %66 : vector<1x1xf32>
    %68 = arith.mulf %64, %66 : vector<1x1xf32>
    %c6 = arith.constant 6 : index
    %c0_45 = arith.constant 0 : index
    %69 = vector.load %arg1[%c6, %c0_45] : memref<8x128xf32, #tpu.memory_space<vmem>>, vector<1x1xf32>
    %c7 = arith.constant 7 : index
    %c0_46 = arith.constant 0 : index
    %70 = vector.load %arg1[%c7, %c0_46] : memref<8x128xf32, #tpu.memory_space<vmem>>, vector<1x1xf32>
    %71 = arith.maximumf %69, %70 : vector<1x1xf32>
    %72 = arith.subf %69, %71 : vector<1x1xf32>
    %73 = math.exp %72 : vector<1x1xf32>
    %74 = arith.subf %70, %71 : vector<1x1xf32>
    %75 = math.exp %74 : vector<1x1xf32>
    %76 = arith.addf %73, %75 : vector<1x1xf32>
    %77 = tpu.reciprocal %76 {approx = true} : vector<1x1xf32> -> vector<1x1xf32>
    %78 = arith.mulf %73, %77 : vector<1x1xf32>
    %79 = arith.mulf %75, %77 : vector<1x1xf32>
    %80 = vector.broadcast %45 : vector<1x1xf32> to vector<8x512xf32>
    %81 = arith.mulf %80, %8 : vector<8x512xf32>
    %82 = vector.broadcast %46 : vector<1x1xf32> to vector<8x512xf32>
    %83 = arith.mulf %82, %17 : vector<8x512xf32>
    %84 = arith.addf %81, %83 : vector<8x512xf32>
    %c0_47 = arith.constant 0 : index
    %c0_48 = arith.constant 0 : index
    %c0_49 = arith.constant 0 : index
    %85 = vector.load %arg6[%c0_47, %c0_48, %c0_49] : memref<2x8x512xf32, #tpu.memory_space<vmem>>, vector<1x8x512xf32>
    %86 = vector.shape_cast %85 : vector<1x8x512xf32> to vector<8x512xf32>
    %87 = vector.shape_cast %84 : vector<8x512xf32> to vector<1x8x512xf32>
    tpu.vector_store %arg6[%c0_47, %c0_48, %c0_49], %87 {strides = array<i32>} : memref<2x8x512xf32, #tpu.memory_space<vmem>>, vector<1x8x512xf32>,
    %88 = vector.broadcast %67 : vector<1x1xf32> to vector<8x512xf32>
    %89 = arith.mulf %88, %26 : vector<8x512xf32>
    %90 = vector.broadcast %68 : vector<1x1xf32> to vector<8x512xf32>
    %91 = arith.mulf %90, %35 : vector<8x512xf32>
    %92 = arith.addf %89, %91 : vector<8x512xf32>
    %c0_50 = arith.constant 0 : index
    %c0_51 = arith.constant 0 : index
    %c0_52 = arith.constant 0 : index
    %93 = vector.load %arg7[%c0_50, %c0_51, %c0_52] : memref<2x8x512xf32, #tpu.memory_space<vmem>>, vector<1x8x512xf32>
    %94 = vector.shape_cast %93 : vector<1x8x512xf32> to vector<8x512xf32>
    %95 = vector.shape_cast %92 : vector<8x512xf32> to vector<1x8x512xf32>
    tpu.vector_store %arg7[%c0_50, %c0_51, %c0_52], %95 {strides = array<i32>} : memref<2x8x512xf32, #tpu.memory_space<vmem>>, vector<1x8x512xf32>,
    %96 = vector.broadcast %56 : vector<1x1xf32> to vector<8x512xf32>
    %97 = arith.mulf %96, %8 : vector<8x512xf32>
    %98 = vector.broadcast %57 : vector<1x1xf32> to vector<8x512xf32>
    %99 = arith.mulf %98, %17 : vector<8x512xf32>
    %100 = arith.addf %97, %99 : vector<8x512xf32>
    %c1_53 = arith.constant 1 : index
    %c0_54 = arith.constant 0 : index
    %c0_55 = arith.constant 0 : index
    %101 = vector.load %arg6[%c1_53, %c0_54, %c0_55] : memref<2x8x512xf32, #tpu.memory_space<vmem>>, vector<1x8x512xf32>
    %102 = vector.shape_cast %101 : vector<1x8x512xf32> to vector<8x512xf32>
    %103 = vector.shape_cast %100 : vector<8x512xf32> to vector<1x8x512xf32>
    tpu.vector_store %arg6[%c1_53, %c0_54, %c0_55], %103 {strides = array<i32>} : memref<2x8x512xf32, #tpu.memory_space<vmem>>, vector<1x8x512xf32>,
    %104 = vector.broadcast %78 : vector<1x1xf32> to vector<8x512xf32>
    %105 = arith.mulf %104, %26 : vector<8x512xf32>
    %106 = vector.broadcast %79 : vector<1x1xf32> to vector<8x512xf32>
    %107 = arith.mulf %106, %35 : vector<8x512xf32>
    %108 = arith.addf %105, %107 : vector<8x512xf32>
    %c1_56 = arith.constant 1 : index
    %c0_57 = arith.constant 0 : index
    %c0_58 = arith.constant 0 : index
    %109 = vector.load %arg7[%c1_56, %c0_57, %c0_58] : memref<2x8x512xf32, #tpu.memory_space<vmem>>, vector<1x8x512xf32>
    %110 = vector.shape_cast %109 : vector<1x8x512xf32> to vector<8x512xf32>
    %111 = vector.shape_cast %108 : vector<8x512xf32> to vector<1x8x512xf32>
    tpu.vector_store %arg7[%c1_56, %c0_57, %c0_58], %111 {strides = array<i32>} : memref<2x8x512xf32, #tpu.memory_space<vmem>>, vector<1x8x512xf32>,
    return
  }
  func.func @transform_0(%arg0: i32) -> (i32, i32) {
    %c0_i32 = arith.constant 0 : i32
    %c0_i32_0 = arith.constant 0 : i32
    %c0_i32_1 = arith.constant 0 : i32
    return %c0_i32, %c0_i32_0 : i32, i32
  }
  func.func @transform_1(%arg0: i32) -> (i32, i32, i32) {
    %c0_i32 = arith.constant 0 : i32
    %c0_i32_0 = arith.constant 0 : i32
    %c0_i32_1 = arith.constant 0 : i32
    return %c0_i32, %c0_i32_0, %arg0 : i32, i32, i32
  }
  func.func @transform_2(%arg0: i32) -> (i32, i32, i32) {
    %c0_i32 = arith.constant 0 : i32
    %c0_i32_0 = arith.constant 0 : i32
    %c0_i32_1 = arith.constant 0 : i32
    return %c0_i32, %c0_i32_0, %arg0 : i32, i32, i32
  }
  func.func @transform_3(%arg0: i32) -> (i32, i32, i32) {
    %c0_i32 = arith.constant 0 : i32
    %c0_i32_0 = arith.constant 0 : i32
    %c0_i32_1 = arith.constant 0 : i32
    %c0_i32_2 = arith.constant 0 : i32
    return %c0_i32, %c0_i32_0, %c0_i32_1 : i32, i32, i32
  }
  func.func @transform_4(%arg0: i32) -> (i32, i32, i32) {
    %c0_i32 = arith.constant 0 : i32
    %c0_i32_0 = arith.constant 0 : i32
    %c0_i32_1 = arith.constant 0 : i32
    %c0_i32_2 = arith.constant 0 : i32
    return %c0_i32, %c0_i32_0, %c0_i32_1 : i32, i32, i32
  }
  func.func @transform_5(%arg0: i32) -> (i32, i32, i32) {
    %c0_i32 = arith.constant 0 : i32
    %c0_i32_0 = arith.constant 0 : i32
    %c0_i32_1 = arith.constant 0 : i32
    return %c0_i32, %c0_i32_0, %arg0 : i32, i32, i32
  }
  func.func @transform_6(%arg0: i32) -> (i32, i32, i32) {
    %c0_i32 = arith.constant 0 : i32
    %c0_i32_0 = arith.constant 0 : i32
    %c0_i32_1 = arith.constant 0 : i32
    return %c0_i32, %c0_i32_0, %arg0 : i32, i32, i32
  }
}

</mosaic_0001>

<bundles_post_ra>
// kernel: cross_attention_3d.3
= control target key start
LH: loop header
LB: loop body
LE: loop exit
PB: predicated region body
PF: predicated region fallthrough
CT: control target
= control target key end

     0   :  { %s1469_s21 = smov 0   ;;  %s1471_s22 = smov 0   ;;  %s1670_s0 = inlined_call_operand.vmem [shape: f32[8,128], index: 0, kind: input, shape index: {}]   ;;  %s1671_s1 = inlined_call_operand.vmem [shape: f32[2,8,1024], index: 1, kind: input, shape index: {}]   ;;  %s1672_s2 = inlined_call_operand.vmem [shape: f32[2,8,1024], index: 2, kind: input, shape index: {}]   ;;  %s1673_s3 = inlined_call_operand.vmem [shape: f32[2,8,8], index: 3, kind: input, shape index: {}]   ;;  %s1674_s4 = inlined_call_operand.vmem [shape: f32[2,8,1], index: 4, kind: input, shape index: {}]   ;;  %s1675_s5 = inlined_call_operand.vmem [shape: f32[2,8,1024], index: 5, kind: output, shape index: {0}]   ;;  %s1676_s6 = inlined_call_operand.vmem [shape: f32[2,8,1024], index: 6, kind: output, shape index: {1}]  }
   0x1   :  { %s1473_s23 = smov 0  }
   0x2 LB: > { %s1485_s24 = sadd.s32 4294967295, %s1430_s23   ;;  %s1488_s25 = sadd.s32 1, %s1430_s23   ;;  %s1430_s23 = sphi %s1473_s23, %s1681_s23   ;;  %s1426_s22 = sphi %s1471_s22, %s1680_s22   ;;  %s1422_s21 = sphi %s1469_s21, %s1679_s21  }
   0x3   : > { %s42_s26 = ssub.s32 %s1430_s23, %s1488_s25  ;;  %s45_s27 = sadd.s32 1, %s1426_s22 }
   0x4   : > { %p43_p0 = scmp.eq.s32.totalorder %s42_s26, 0  ;;  %p52_p1 = scmp.ne.s32.totalorder %s1426_s22, %s1422_s21 }
   0x5   : > { %p53_p2 = scmp.eq.s32.totalorder %s1430_s23, 0  ;;  %p150_p3 = scmp.eq.s32.totalorder %s1485_s24, 1 }
   0x6   : > { %s1498_s28 = scalar_select %p43_p0, %s1426_s22, %s45_s27  }
   0x7   : > { %p1500_p4 = por %p53_p2, %p52_p1  ;;  %p1504_p5 = por %p150_p3, %p52_p1 }
   0x8   : > { %p1291_p6 = scmp.ge.s32.totalorder %s1430_s23, 2 }
   0xa   : > { %207 = sbr.rel (%p1291_p6) target bundleno = 31 (0x1f), region = 28 }
   0xf   : > { %210 = sbr.rel (!%p1500_p4) target bundleno = 23 (0x17), region = 32  ;;  %s212_s7 = sand.u32 (%p1500_p4), 1, %s1426_s22  }
  0x10   : > { %s1337_s8 = sshll.u32 (%p1500_p4), %s1430_s23, 5  ;;  %s1292_s9 = sshll.u32 (%p1500_p4), %s212_s7, 6 }
  0x11   : > { %s217_s12 = scalar_lea.vmem (%p1500_p4), %s1671_s1, %s1337_s8  ;;  %s214_s13 = scalar_lea.vmem (%p1500_p4), [#allocation2], %s1292_s9 }
  0x12   : > { %v230_v0 = vld [vmem:[%s217_s12] sm:$0xff] (%p1500_p4)  ;;  %v232_v1 = vld [vmem:[%s217_s12 + $0x8] sm:$0xff] (%p1500_p4)  ;;  %v234_v2 = vld [vmem:[%s217_s12 + $0x10] sm:$0xff] (%p1500_p4) }
  0x13   : > { %231 = vst [vmem:[%s214_s13] sm:$0xff] (%p1500_p4), %v230_v0  ;;  %233 = vst [vmem:[%s214_s13 + $0x8] sm:$0xff] (%p1500_p4), %v232_v1  ;;  %v236_v3 = vld [vmem:[%s217_s12 + $0x18] sm:$0xff] (%p1500_p4)  ;;  %v238_v4 = vld [vmem:[%s217_s12 + $0x40] sm:$0xff] (%p1500_p4) }
  0x14   : > { %235 = vst [vmem:[%s214_s13 + $0x10] sm:$0xff] %v234_v2  ;;  %v240_v5 = vld [vmem:[%s217_s12 + $0x48] sm:$0xff]  ;;  %237 = vst [vmem:[%s214_s13 + $0x18] sm:$0xff] %v236_v3  ;;  %v242_v6 = vld [vmem:[%s217_s12 + $0x50] sm:$0xff] }
  0x15   : > { %239 = vst [vmem:[%s214_s13 + $0x20] sm:$0xff] %v238_v4  ;;  %241 = vst [vmem:[%s214_s13 + $0x28] sm:$0xff] %v240_v5  ;;  %v244_v7 = vld [vmem:[%s217_s12 + $0x58] sm:$0xff] }
  0x16   : > { %243 = vst [vmem:[%s214_s13 + $0x30] sm:$0xff] %v242_v6  ;;  %245 = vst [vmem:[%s214_s13 + $0x38] sm:$0xff] %v244_v7 }
  0x17 PF: > { %251 = sbr.rel (!%p1500_p4) target bundleno = 31 (0x1f), region = 55  ;;  %s253_s14 = sand.u32 (%p1500_p4), 1, %s1426_s22  }
  0x18   : > { %s1338_s15 = sshll.u32 (%p1500_p4), %s1430_s23, 5  ;;  %s1295_s16 = sshll.u32 (%p1500_p4), %s253_s14, 6 }
  0x19   : > { %s258_s19 = scalar_lea.vmem (%p1500_p4), %s1672_s2, %s1338_s15  ;;  %s255_s20 = scalar_lea.vmem (%p1500_p4), [#allocation3], %s1295_s16 }
  0x1a   : > { %v271_v8 = vld [vmem:[%s258_s19] sm:$0xff] (%p1500_p4)  ;;  %v273_v9 = vld [vmem:[%s258_s19 + $0x8] sm:$0xff] (%p1500_p4)  ;;  %v275_v10 = vld [vmem:[%s258_s19 + $0x10] sm:$0xff] (%p1500_p4) }
  0x1b   : > { %272 = vst [vmem:[%s255_s20] sm:$0xff] (%p1500_p4), %v271_v8  ;;  %274 = vst [vmem:[%s255_s20 + $0x8] sm:$0xff] (%p1500_p4), %v273_v9  ;;  %v277_v11 = vld [vmem:[%s258_s19 + $0x18] sm:$0xff] (%p1500_p4)  ;;  %v279_v12 = vld [vmem:[%s258_s19 + $0x40] sm:$0xff] (%p1500_p4) }
  0x1c   : > { %276 = vst [vmem:[%s255_s20 + $0x10] sm:$0xff] %v275_v10  ;;  %v281_v13 = vld [vmem:[%s258_s19 + $0x48] sm:$0xff]  ;;  %278 = vst [vmem:[%s255_s20 + $0x18] sm:$0xff] %v277_v11  ;;  %v283_v14 = vld [vmem:[%s258_s19 + $0x50] sm:$0xff] }
  0x1d   : > { %280 = vst [vmem:[%s255_s20 + $0x20] sm:$0xff] %v279_v12  ;;  %282 = vst [vmem:[%s255_s20 + $0x28] sm:$0xff] %v281_v13  ;;  %v285_v15 = vld [vmem:[%s258_s19 + $0x58] sm:$0xff] }
  0x1e   : > { %284 = vst [vmem:[%s255_s20 + $0x30] sm:$0xff] %v283_v14  ;;  %286 = vst [vmem:[%s255_s20 + $0x38] sm:$0xff] %v285_v15 }
  0x1f PF: > { %p1298_p7 = scmp.ge.s32.totalorder %s1430_s23, 1  ;;  %p291_p8 = scmp.lt.s32.totalorder %s1430_s23, 3 }
  0x21   : > { %p292_p9 = pnand %p1298_p7, %p291_p8 }
  0x22   : > { %s298_s26 = sand.u32 (!%p292_p9), 1, %s1422_s21  }
  0x23   : > { %295 = sbr.rel (%p292_p9) target bundleno = 274 (0x112), region = 78  ;;  %s1526_s27 = sshll.u32 (!%p292_p9), %s298_s26, 6 }
  0x24   : > { %s307_s12 = scalar_lea.vmem (!%p292_p9), [#allocation3], %s1526_s27  ;;  %s1549_s15 = scalar_lea.vmem (!%p292_p9), [#allocation2], %s1526_s27 }
  0x25   : > { %s1599_s20 = scalar_lea.vmem (!%p292_p9), [#allocation4], %s1526_s27  ;;  %s1620_s26 = scalar_lea.vmem (!%p292_p9), [#allocation5], %s1526_s27 }
  0x28   : > { %v1432_v16 = vmov 0.0   ;;  %v350_v17 = vld [vmem:[%s1674_s4] sm:$0xff]  ;;  %v1433_v20 = vmov 0   ;;  %v347_v22 = vld [vmem:[%s307_s12 + $0x8] sm:$0xff]  ;;  %v349_v23 = vld [vmem:[%s307_s12 + $0x18] sm:$0xff]  ;;  %vm356_vm0 = vcmask 64512  }
  0x29   : > { %424 = vmatprep.mubr.f32.mxu0 %v1432_v16  ;;  %495 = vmatprep.mubr.f32.mxu1 %v1432_v16  ;;  %v954_v18 = vld [vmem:[%s1670_s0] sm:$0x1]  ;;  %v955_v21 = vld [vmem:[%s1670_s0 + $0x1] sm:$0x1]  ;;  %v348_v26 = vld [vmem:[%s307_s12 + $0x10] sm:$0xff]  ;;  %s1339_s27 = sshll.u32 (%p1504_p5), %s1485_s24, 5 }
  0x2a   : > { %v345_v19 = vld [vmem:[%s1673_s3] sm:$0xff]  ;;  %1383 = vset.pattern.permute.xlu0 %v1433_v20  ;;  %v956_v25 = vmax.f32 %v954_v18, %v955_v21  ;;  %390 = vmatprep.subr.mxu0 %v347_v22  ;;  %v1306_v27 = vld [vmem:[%s307_s12 + $0x28] sm:$0xff]  ;;  %v1308_v28 = vld [vmem:[%s307_s12 + $0x38] sm:$0xff]  ;;  %s1117_s8 = scalar_lea.vmem (%p1504_p5), %s1675_s5, %s1339_s27 }
  0x2b   : > { %v346_v24 = vld [vmem:[%s307_s12] sm:$0xff]  ;;  %353 = vperm.xlu0 %1383, %v350_v17   ;;  %461 = vmatprep.subr.mxu1 %v349_v23  ;;  %v1307_v30 = vld [vmem:[%s307_s12 + $0x30] sm:$0xff]  ;;  %v652_v34 = vld [vmem:[%s1549_s15 + $0x8] sm:$0xff] }
  0x2c   : > { %391 = vmatpush1.msra.mxu0 %v346_v24  ;;  %462 = vmatpush1.msra.mxu1 %v348_v26  ;;  %v1305_v29 = vld [vmem:[%s307_s12 + $0x20] sm:$0xff]  ;;  %v957_v31 = vsub.f32 %v954_v18, %v956_v25  ;;  %v960_v32 = vsub.f32 %v955_v21, %v956_v25  ;;  %v654_v35 = vld [vmem:[%s1549_s15 + $0x18] sm:$0xff]  ;;  %v653_v38 = vld [vmem:[%s1549_s15 + $0x10] sm:$0xff] }
  0x2d   : > { %1303 = vmatmul.mubr.msk.f32.vlgmr.msra.gmra.mxu0 %vm356_vm0, %v345_v19  ;;  %1304 = vmatmul.mubr.msk.f32.vlgmr.msra.gmra.mxu1 %vm356_vm0, %v345_v19  ;;  %v980_v33 = vld [vmem:[%s1670_s0 + $0x4] sm:$0x1]  ;;  %v981_v40 = vld [vmem:[%s1670_s0 + $0x5] sm:$0x1]  ;;  %v967_v42 = vld [vmem:[%s1670_s0 + $0x2] sm:$0x1] }
  0x2e   : > { %537 = vmatprep.subr.mxu0 %v1306_v27  ;;  %608 = vmatprep.subr.mxu1 %v1308_v28  ;;  %v958_v36 = vmul.f32 1.442695, %v957_v31  ;;  %v651_v37 = vld [vmem:[%s1549_s15] sm:$0xff]  ;;  %v961_v39 = vmul.f32 1.442695, %v960_v32  ;;  %v982_v41 = vmax.f32 %v980_v33, %v981_v40  ;;  %v1311_v47 = vld [vmem:[%s1673_s3 + $0x8] sm:$0xff] }
  0x2f   : > { %538 = vmatpush1.msra.mxu0 %v1305_v29  ;;  %609 = vmatpush1.msra.mxu1 %v1307_v30  ;;  %v968_v43 = vld [vmem:[%s1670_s0 + $0x3] sm:$0x1]  ;;  %v993_v44 = vld [vmem:[%s1670_s0 + $0x6] sm:$0x1]  ;;  %v994_v46 = vld [vmem:[%s1670_s0 + $0x7] sm:$0x1] }
  0x30   : > { %571 = vmatprep.mubr.f32.mxu0 %v1432_v16  ;;  %642 = vmatprep.mubr.f32.mxu1 %v1432_v16  ;;  %1384 = vpow2.f32 %v958_v36  ;;  %v969_v45 = vmax.f32 %v967_v42, %v968_v43  ;;  %v983_v48 = vsub.f32 %v980_v33, %v982_v41  ;;  %v986_v49 = vsub.f32 %v981_v40, %v982_v41  ;;  %v1316_v51 = vld [vmem:[%s1549_s15 + $0x28] sm:$0xff]  ;;  %v1318_v52 = vld [vmem:[%s1549_s15 + $0x38] sm:$0xff]  ;;  %v1315_v55 = vld [vmem:[%s1549_s15 + $0x20] sm:$0xff] }
  0x31   : > { %1309 = vmatmul.mubr.msk.f32.vlgmr.msra.gmra.mxu0 %vm356_vm0, %v345_v19  ;;  %1310 = vmatmul.mubr.msk.f32.vlgmr.msra.gmra.mxu1 %vm356_vm0, %v345_v19  ;;  %1386 = vpow2.f32 %v961_v39  ;;  %v995_v50 = vmax.f32 %v993_v44, %v994_v46  ;;  %v1317_v56 = vld [vmem:[%s1549_s15 + $0x30] sm:$0xff]  ;;  %v1312_v0 = vld [vmem:[%s1674_s4 + $0x8] sm:$0xff] }
  0x32   : > { %695 = vmatprep.subr.mxu0 %v652_v34  ;;  %766 = vmatprep.subr.mxu1 %v654_v35  ;;  %v970_v53 = vsub.f32 %v967_v42, %v969_v45  ;;  %v973_v54 = vsub.f32 %v968_v43, %v969_v45  ;;  %v984_v57 = vmul.f32 1.442695, %v983_v48  ;;  %v987_v58 = vmul.f32 1.442695, %v986_v49 }
  0x33   : > { %696 = vmatpush1.msra.mxu0 %v651_v37  ;;  %767 = vmatpush1.msra.mxu1 %v653_v38  ;;  %v996_v59 = vsub.f32 %v993_v44, %v995_v50  ;;  %v999_v60 = vsub.f32 %v994_v46, %v995_v50 }
  0x34   : > { %729 = vmatprep.mubr.f32.mxu0 %v1432_v16  ;;  %800 = vmatprep.mubr.f32.mxu1 %v1432_v16  ;;  %v971_v61 = vmul.f32 1.442695, %v970_v53  ;;  %v974_v62 = vmul.f32 1.442695, %v973_v54  ;;  %1388 = vpow2.f32 %v984_v57 }
  0x35   : > { %1313 = vmatmul.mubr.msk.f32.vlgmr.msra.gmra.mxu0 %vm356_vm0, %v1311_v47  ;;  %1314 = vmatmul.mubr.msk.f32.vlgmr.msra.gmra.mxu1 %vm356_vm0, %v1311_v47  ;;  %v997_v63 = vmul.f32 1.442695, %v996_v59  ;;  %1390 = vpow2.f32 %v987_v58  ;;  %v1000_v1 = vmul.f32 1.442695, %v999_v60 }
  0x36   : > { %842 = vmatprep.subr.mxu0 %v1316_v51  ;;  %913 = vmatprep.subr.mxu1 %v1318_v52  ;;  %1392 = vpow2.f32 %v971_v61 }
  0x37   : > { %843 = vmatpush1.msra.mxu0 %v1315_v55  ;;  %914 = vmatpush1.msra.mxu1 %v1317_v56  ;;  %1394 = vpow2.f32 %v974_v62 }
  0x38   : > { %876 = vmatprep.mubr.f32.mxu0 %v1432_v16  ;;  %947 = vmatprep.mubr.f32.mxu1 %v1432_v16  ;;  %1396 = vpow2.f32 %v997_v63 }
  0x39   : > { %1319 = vmatmul.mubr.msk.f32.vlgmr.msra.gmra.mxu0 %vm356_vm0, %v1311_v47  ;;  %1320 = vmatmul.mubr.msk.f32.vlgmr.msra.gmra.mxu1 %vm356_vm0, %v1311_v47  ;;  %1398 = vpow2.f32 %v1000_v1 }
  0x3a   : > { %659 = vperm.xlu0 %1383, %v1312_v0  }
  0x3d   : > { %v1385_v2 = vpop.eup %1384 }
  0x3e   : > { %v1387_v3 = vpop.eup %1386 }
  0x3f   : > { %v963_v4 = vadd.f32 %v1387_v3, %v1385_v2 }
  0x41   : > { %1400 = vrcp.f32 %v963_v4  ;;  %v1389_v5 = vpop.eup %1388 }
  0x42   : > { %v1391_v6 = vpop.eup %1390 }
  0x43   : > { %v1393_v7 = vpop.eup %1392  ;;  %v989_v8 = vadd.f32 %v1391_v6, %v1389_v5 }
  0x44   : > { %v1395_v9 = vpop.eup %1394 }
  0x45   : > { %v1397_v10 = vpop.eup %1396  ;;  %1402 = vrcp.f32 %v989_v8  ;;  %v976_v11 = vadd.f32 %v1395_v9, %v1393_v7 }
  0x46   : > { %v1399_v12 = vpop.eup %1398 }
  0x47   : > { %1404 = vrcp.f32 %v976_v11  ;;  %v1002_v13 = vadd.f32 %v1399_v12, %v1397_v10 }
  0x49   : > { %1406 = vrcp.f32 %v1002_v13 }
  0x4e   : > { %v1401_v14 = vpop.eup %1400 }
  0x4f   : > { %v965_v15 = vmul.f32 %v1401_v14, %v1385_v2  ;;  %v966_v16 = vmul.f32 %v1401_v14, %v1387_v3 }
  0x51   : > { %1341 = vpush %v965_v15 }
  0x52   : > { %1343 = vpush %v966_v16  ;;  %v1403_v17 = vpop.eup %1402 }
  0x53   : > { %v991_v18 = vmul.f32 %v1403_v17, %v1389_v5  ;;  %v992_v19 = vmul.f32 %v1403_v17, %v1391_v6 }
  0x54   : > { %v1405_v20 = vpop.eup %1404 }
  0x55   : > { %1345 = vpush %v991_v18  ;;  %v978_v21 = vmul.f32 %v1405_v20, %v1393_v7  ;;  %v979_v22 = vmul.f32 %v1405_v20, %v1395_v9 }
  0x56   : > { %v1407_v23 = vpop.eup %1406  ;;  %1347 = vpush %v992_v19 }
  0x57   : > { %1349 = vpush %v978_v21  ;;  %v1004_v24 = vmul.f32 %v1407_v23, %v1397_v10  ;;  %v1005_v25 = vmul.f32 %v1407_v23, %v1399_v12 }
  0x58   : > { %1351 = vpush %v979_v22 }
  0x59   : > { %1353 = vpush %v1004_v24 }
  0x5a   : > { %1355 = vpush %v1005_v25 }
  0x82   : > { %s1342_s12 = spop %1341 }
  0x83   : > { %s1344_s13 = spop %1343  ;;  %v1008_v33 = vstv %s1342_s12 }
  0x84   : > { %v1016_v37 = vstv %s1344_s13 }
  0x86   : > { %s1346_s14 = spop %1345 }
  0x87   : > { %s1348_s15 = spop %1347  ;;  %v1592_v38 = vstv %s1346_s14 }
  0x88   : > { %s1350_s16 = spop %1349  ;;  %v1594_v39 = vstv %s1348_s15 }
  0x89   : > { %s1352_s17 = spop %1351  ;;  %v1056_v34 = vstv %s1350_s16 }
  0x8a   : > { %s1354_s18 = spop %1353  ;;  %v1064_v42 = vstv %s1352_s17 }
  0x8b   : > { %v1596_v43 = vstv %s1354_s18  ;;  %s1356_s19 = spop %1355 }
  0x8c   : > { %v1089_v23 = vstv %s1356_s19 }
  0xa6   : > { %v354_v26 = vpop.permute.xlu0 %353 }
  0xb5   : > { %v660_v4 = vpop.permute.xlu0 %659 }
  0xed   : > { %v426_v27 = vpop.f32.mrf.mxu0  ;;  %v497_v28 = vpop.f32.mrf.mxu1 }
  0xee   : > { %v427_v29 = vadd.f32 %v426_v27, %v354_v26  ;;  %v498_v30 = vadd.f32 %v497_v28, %v354_v26 }
  0xef   : > { %v428_v31 = vpop.f32.mrf.mxu0  ;;  %v499_v32 = vpop.f32.mrf.mxu1 }
  0xf0   : > { %v429_v35 = vadd.f32 %v428_v31, %v354_v26  ;;  %v500_v36 = vadd.f32 %v499_v32, %v354_v26  ;;  %v1010_v44 = vmul.f32 %v1008_v33, %v427_v29  ;;  %v1012_v45 = vmul.f32 %v1008_v33, %v498_v30 }
  0xf1   : > { %v573_v40 = vpop.f32.mrf.mxu0  ;;  %v644_v41 = vpop.f32.mrf.mxu1  ;;  %v1058_v46 = vmul.f32 %v1056_v34, %v427_v29  ;;  %v1060_v47 = vmul.f32 %v1056_v34, %v498_v30 }
  0xf2   : > { %v1011_v48 = vmul.f32 %v1008_v33, %v429_v35  ;;  %v1013_v49 = vmul.f32 %v1008_v33, %v500_v36  ;;  %v574_v50 = vadd.f32 %v573_v40, %v354_v26  ;;  %v645_v51 = vadd.f32 %v644_v41, %v354_v26 }
  0xf3   : > { %v575_v52 = vpop.f32.mrf.mxu0  ;;  %v646_v53 = vpop.f32.mrf.mxu1  ;;  %v1059_v54 = vmul.f32 %v1056_v34, %v429_v35  ;;  %v1061_v55 = vmul.f32 %v1056_v34, %v500_v36 }
  0xf4   : > { %v576_v56 = vadd.f32 %v575_v52, %v354_v26  ;;  %v647_v57 = vadd.f32 %v646_v53, %v354_v26  ;;  %v1018_v58 = vmul.f32 %v1016_v37, %v574_v50  ;;  %v1020_v59 = vmul.f32 %v1016_v37, %v645_v51 }
  0xf5   : > { %v1066_v60 = vmul.f32 %v1064_v42, %v574_v50  ;;  %v1068_v61 = vmul.f32 %v1064_v42, %v645_v51  ;;  %v731_v62 = vpop.f32.mrf.mxu0  ;;  %v802_v63 = vpop.f32.mrf.mxu1 }
  0xf6   : > { %v1019_v0 = vmul.f32 %v1016_v37, %v576_v56  ;;  %v1067_v1 = vmul.f32 %v1064_v42, %v576_v56  ;;  %v1021_v2 = vmul.f32 %v1016_v37, %v647_v57  ;;  %v1069_v3 = vmul.f32 %v1064_v42, %v647_v57 }
  0xf7   : > { %v1022_v5 = vadd.f32 %v1018_v58, %v1010_v44  ;;  %v1024_v6 = vadd.f32 %v1020_v59, %v1012_v45  ;;  %v1070_v7 = vadd.f32 %v1066_v60, %v1058_v46  ;;  %v1072_v8 = vadd.f32 %v1068_v61, %v1060_v47  ;;  %v733_v9 = vpop.f32.mrf.mxu0  ;;  %v804_v10 = vpop.f32.mrf.mxu1 }
  0xf8   : > { %v1023_v11 = vadd.f32 %v1019_v0, %v1011_v48  ;;  %v1071_v12 = vadd.f32 %v1067_v1, %v1059_v54  ;;  %v1025_v13 = vadd.f32 %v1021_v2, %v1013_v49  ;;  %v1073_v14 = vadd.f32 %v1069_v3, %v1061_v55 }
  0xf9   : > { %1026 = vst [vmem:[%s1599_s20] sm:$0xff] %v1022_v5  ;;  %1028 = vst [vmem:[%s1599_s20 + $0x10] sm:$0xff] %v1024_v6  ;;  %v734_v15 = vadd.f32 %v733_v9, %v660_v4  ;;  %v805_v16 = vadd.f32 %v804_v10, %v660_v4  ;;  %v732_v17 = vadd.f32 %v731_v62, %v660_v4  ;;  %v878_v19 = vpop.f32.mrf.mxu0  ;;  %v949_v20 = vpop.f32.mrf.mxu1 }
  0xfa   : > { %1321 = vst [vmem:[%s1599_s20 + $0x20] sm:$0xff] %v1070_v7  ;;  %1323 = vst [vmem:[%s1599_s20 + $0x30] sm:$0xff] %v1072_v8  ;;  %v803_v18 = vadd.f32 %v802_v63, %v660_v4  ;;  %v879_v21 = vadd.f32 %v878_v19, %v660_v4  ;;  %v950_v22 = vadd.f32 %v949_v20, %v660_v4 }
  0xfb   : > { %1027 = vst [vmem:[%s1599_s20 + $0x8] sm:$0xff] %v1023_v11  ;;  %1322 = vst [vmem:[%s1599_s20 + $0x28] sm:$0xff] %v1071_v12  ;;  %v1035_v24 = vmul.f32 %v1592_v38, %v734_v15  ;;  %v1037_v25 = vmul.f32 %v1592_v38, %v805_v16  ;;  %v880_v26 = vpop.f32.mrf.mxu0  ;;  %v951_v27 = vpop.f32.mrf.mxu1  ;;  %v1083_v28 = vmul.f32 %v1596_v43, %v732_v17 }
  0xfc   : > { %1029 = vst [vmem:[%s1599_s20 + $0x18] sm:$0xff] %v1025_v13  ;;  %1324 = vst [vmem:[%s1599_s20 + $0x38] sm:$0xff] %v1073_v14  ;;  %v1085_v29 = vmul.f32 %v1596_v43, %v803_v18  ;;  %v1034_v30 = vmul.f32 %v1592_v38, %v732_v17  ;;  %v1042_v31 = vmul.f32 %v1594_v39, %v879_v21 }
  0xfd   : > { %v1036_v32 = vmul.f32 %v1592_v38, %v803_v18  ;;  %v1044_v33 = vmul.f32 %v1594_v39, %v950_v22  ;;  %v1091_v34 = vmul.f32 %v1089_v23, %v879_v21  ;;  %v1093_v35 = vmul.f32 %v1089_v23, %v950_v22 }
  0xfe   : > { %v1084_v36 = vmul.f32 %v1596_v43, %v734_v15  ;;  %v1046_v37 = vadd.f32 %v1042_v31, %v1034_v30  ;;  %v881_v40 = vadd.f32 %v880_v26, %v660_v4  ;;  %v952_v41 = vadd.f32 %v951_v27, %v660_v4 }
  0xff   : > { %v1086_v42 = vmul.f32 %v1596_v43, %v805_v16  ;;  %v1048_v44 = vadd.f32 %v1044_v33, %v1036_v32  ;;  %v1095_v45 = vadd.f32 %v1091_v34, %v1083_v28  ;;  %v1097_v46 = vadd.f32 %v1093_v35, %v1085_v29 }
 0x100   : > { %1050 = vst [vmem:[%s1620_s26] sm:$0xff] %v1046_v37  ;;  %v1043_v38 = vmul.f32 %v1594_v39, %v881_v40  ;;  %v1092_v47 = vmul.f32 %v1089_v23, %v881_v40  ;;  %v1045_v48 = vmul.f32 %v1594_v39, %v952_v41  ;;  %v1094_v43 = vmul.f32 %v1089_v23, %v952_v41  ;;  %v1130_v39 = vld [vmem:[%s1599_s20] sm:$0xff] (%p1504_p5)  ;;  %v1134_v54 = vld [vmem:[%s1599_s20 + $0x10] sm:$0xff] (%p1504_p5) }
 0x101   : > { %1052 = vst [vmem:[%s1620_s26 + $0x10] sm:$0xff] %v1048_v44  ;;  %1325 = vst [vmem:[%s1620_s26 + $0x20] sm:$0xff] %v1095_v45  ;;  %1114 = sbr.rel (!%p1504_p5) target bundleno = 265 (0x109), region = 90  ;;  %v1138_v56 = vld [vmem:[%s1599_s20 + $0x20] sm:$0xff] (%p1504_p5)  ;;  %v1142_v58 = vld [vmem:[%s1599_s20 + $0x30] sm:$0xff] (%p1504_p5) }
 0x102   : > { %1327 = vst [vmem:[%s1620_s26 + $0x30] sm:$0xff] %v1097_v46  ;;  %v1047_v49 = vadd.f32 %v1043_v38, %v1035_v24  ;;  %v1096_v50 = vadd.f32 %v1092_v47, %v1084_v36  ;;  %v1049_v51 = vadd.f32 %v1045_v48, %v1037_v25  ;;  %v1098_v52 = vadd.f32 %v1094_v43, %v1086_v42  ;;  %v1132_v53 = vld [vmem:[%s1599_s20 + $0x8] sm:$0xff] (%p1504_p5) }
 0x103   : > { %v1136_v55 = vld [vmem:[%s1599_s20 + $0x18] sm:$0xff] (%p1504_p5)  ;;  %v1140_v57 = vld [vmem:[%s1599_s20 + $0x28] sm:$0xff] (%p1504_p5)  ;;  %1131 = vst [vmem:[%s1117_s8] sm:$0xff] (%p1504_p5), %v1130_v39  ;;  %1133 = vst [vmem:[%s1117_s8 + $0x8] sm:$0xff] (%p1504_p5), %v1132_v53 }
 0x104   : > { %1051 = vst [vmem:[%s1620_s26 + $0x8] sm:$0xff] %v1047_v49  ;;  %1326 = vst [vmem:[%s1620_s26 + $0x28] sm:$0xff] %v1096_v50  ;;  %v1144_v59 = vld [vmem:[%s1599_s20 + $0x38] sm:$0xff] (%p1504_p5) }
 0x105   : > { %1053 = vst [vmem:[%s1620_s26 + $0x18] sm:$0xff] %v1049_v51  ;;  %1328 = vst [vmem:[%s1620_s26 + $0x38] sm:$0xff] %v1098_v52 }
 0x106   : > { %1135 = vst [vmem:[%s1117_s8 + $0x10] sm:$0xff] %v1134_v54  ;;  %1137 = vst [vmem:[%s1117_s8 + $0x18] sm:$0xff] %v1136_v55 }
 0x107   : > { %1139 = vst [vmem:[%s1117_s8 + $0x40] sm:$0xff] %v1138_v56  ;;  %1141 = vst [vmem:[%s1117_s8 + $0x48] sm:$0xff] %v1140_v57 }
 0x108   : > { %1143 = vst [vmem:[%s1117_s8 + $0x50] sm:$0xff] %v1142_v58  ;;  %1145 = vst [vmem:[%s1117_s8 + $0x58] sm:$0xff] %v1144_v59 }
 0x109 PF: > { %1151 = sbr.rel (!%p1504_p5) target bundleno = 274 (0x112), region = 113  ;;  %s1340_s9 = sshll.u32 (%p1504_p5), %s1485_s24, 5 }
 0x10a   : > { %v1167_v60 = vld [vmem:[%s1620_s26] sm:$0xff] (%p1504_p5)  ;;  %s1154_s21 = scalar_lea.vmem (%p1504_p5), %s1676_s6, %s1340_s9 }
 0x10b   : > { %v1171_v62 = vld [vmem:[%s1620_s26 + $0x10] sm:$0xff] (%p1504_p5)  ;;  %v1175_v0 = vld [vmem:[%s1620_s26 + $0x20] sm:$0xff] (%p1504_p5)  ;;  %1168 = vst [vmem:[%s1154_s21] sm:$0xff] (%p1504_p5), %v1167_v60 }
 0x10c   : > { %1172 = vst [vmem:[%s1154_s21 + $0x10] sm:$0xff] (%p1504_p5), %v1171_v62  ;;  %1176 = vst [vmem:[%s1154_s21 + $0x40] sm:$0xff] (%p1504_p5), %v1175_v0  ;;  %v1179_v2 = vld [vmem:[%s1620_s26 + $0x30] sm:$0xff] (%p1504_p5) }
 0x10d   : > { %1180 = vst [vmem:[%s1154_s21 + $0x50] sm:$0xff] (%p1504_p5), %v1179_v2 }
 0x10e   : > { %v1169_v61 = vld [vmem:[%s1620_s26 + $0x8] sm:$0xff] }
 0x10f   : > { %v1173_v63 = vld [vmem:[%s1620_s26 + $0x18] sm:$0xff]  ;;  %v1177_v1 = vld [vmem:[%s1620_s26 + $0x28] sm:$0xff]  ;;  %1170 = vst [vmem:[%s1154_s21 + $0x8] sm:$0xff] %v1169_v61 }
 0x110   : > { %1174 = vst [vmem:[%s1154_s21 + $0x18] sm:$0xff] %v1173_v63  ;;  %1178 = vst [vmem:[%s1154_s21 + $0x48] sm:$0xff] %v1177_v1  ;;  %v1181_v3 = vld [vmem:[%s1620_s26 + $0x38] sm:$0xff] }
 0x111   : > { %1182 = vst [vmem:[%s1154_s21 + $0x58] sm:$0xff] %v1181_v3 }
 0x112 PF: > { %p14_p10 = scmp.ge.s32.totalorder %s1488_s25, 4   ;;  %s1679_s21 = smov %s1426_s22 }
 0x113   : > { %s1680_s22 = smov %s1498_s28  ;;  %s1681_s23 = smov %s1488_s25 }
 0x114   :  { %16 = sbr.rel (!%p14_p10) target bundleno = 2 (0x2), region = 193 }

// kernel: cross_attention_3d.2
= control target key start
LH: loop header
LB: loop body
LE: loop exit
PB: predicated region body
PF: predicated region fallthrough
CT: control target
= control target key end

     0   :  { %s1367_s21 = smov 0   ;;  %s1369_s22 = smov 0   ;;  %s1618_s0 = inlined_call_operand.vmem [shape: f32[2,8,1024], index: 0, kind: input, shape index: {}]   ;;  %s1619_s1 = inlined_call_operand.vmem [shape: f32[2,8,1024], index: 1, kind: input, shape index: {}]   ;;  %s1620_s2 = inlined_call_operand.vmem [shape: f32[16,8], index: 2, kind: input, shape index: {}]   ;;  %s1621_s3 = inlined_call_operand.vmem [shape: f32[16,1], index: 3, kind: input, shape index: {}]   ;;  %s1622_s4 = inlined_call_operand.vmem [shape: f32[16,8], index: 4, kind: input, shape index: {}]   ;;  %s1623_s5 = inlined_call_operand.vmem [shape: f32[16,1], index: 5, kind: input, shape index: {}]   ;;  %s1624_s6 = inlined_call_operand.vmem [shape: f32[8,128], index: 6, kind: output, shape index: {}]  }
   0x1   :  { %s1371_s23 = smov 0  }
   0x2 LB: > { %s1219_s24 = sadd.s32 4294967295, %s1327_s23   ;;  %s1384_s25 = sadd.s32 1, %s1327_s23   ;;  %s1327_s23 = sphi %s1371_s23, %s1628_s23   ;;  %s1323_s22 = sphi %s1369_s22, %s1627_s22   ;;  %s1319_s21 = sphi %s1367_s21, %s1626_s21  }
   0x3   : > { %s20_s26 = ssub.s32 %s1327_s23, %s1384_s25  ;;  %s23_s27 = sadd.s32 1, %s1323_s22 }
   0x4   : > { %p21_p0 = scmp.eq.s32.totalorder %s20_s26, 0  ;;  %p30_p1 = scmp.ne.s32.totalorder %s1323_s22, %s1319_s21 }
   0x5   : > { %p31_p2 = scmp.eq.s32.totalorder %s1327_s23, 0  ;;  %p1221_p4 = scmp.ge.s32.totalorder %s1327_s23, 2 }
   0x6   : > { %s1393_s28 = scalar_select %p21_p0, %s1323_s22, %s23_s27  }
   0x7   : > { %p1395_p3 = por %p31_p2, %p30_p1  ;;  %199 = sbr.rel (%p1221_p4) target bundleno = 28 (0x1c), region = 32 }
   0xc   : > { %202 = sbr.rel (!%p1395_p3) target bundleno = 20 (0x14), region = 36  ;;  %s204_s30 = sand.u32 (%p1395_p3), 1, %s1323_s22  }
   0xd   : > { %s1258_s7 = sshll.u32 (%p1395_p3), %s1327_s23, 5  ;;  %s1222_s8 = sshll.u32 (%p1395_p3), %s204_s30, 6 }
   0xe   : > { %s209_s11 = scalar_lea.vmem (%p1395_p3), %s1618_s0, %s1258_s7  ;;  %s206_s12 = scalar_lea.vmem (%p1395_p3), [#allocation2], %s1222_s8 }
   0xf   : > { %v222_v0 = vld [vmem:[%s209_s11] sm:$0xff] (%p1395_p3)  ;;  %v224_v1 = vld [vmem:[%s209_s11 + $0x8] sm:$0xff] (%p1395_p3)  ;;  %v226_v2 = vld [vmem:[%s209_s11 + $0x10] sm:$0xff] (%p1395_p3) }
  0x10   : > { %223 = vst [vmem:[%s206_s12] sm:$0xff] (%p1395_p3), %v222_v0  ;;  %225 = vst [vmem:[%s206_s12 + $0x8] sm:$0xff] (%p1395_p3), %v224_v1  ;;  %v228_v3 = vld [vmem:[%s209_s11 + $0x18] sm:$0xff] (%p1395_p3)  ;;  %v230_v4 = vld [vmem:[%s209_s11 + $0x40] sm:$0xff] (%p1395_p3) }
  0x11   : > { %227 = vst [vmem:[%s206_s12 + $0x10] sm:$0xff] %v226_v2  ;;  %v232_v5 = vld [vmem:[%s209_s11 + $0x48] sm:$0xff]  ;;  %229 = vst [vmem:[%s206_s12 + $0x18] sm:$0xff] %v228_v3  ;;  %v234_v6 = vld [vmem:[%s209_s11 + $0x50] sm:$0xff] }
  0x12   : > { %231 = vst [vmem:[%s206_s12 + $0x20] sm:$0xff] %v230_v4  ;;  %233 = vst [vmem:[%s206_s12 + $0x28] sm:$0xff] %v232_v5  ;;  %v236_v7 = vld [vmem:[%s209_s11 + $0x58] sm:$0xff] }
  0x13   : > { %235 = vst [vmem:[%s206_s12 + $0x30] sm:$0xff] %v234_v6  ;;  %237 = vst [vmem:[%s206_s12 + $0x38] sm:$0xff] %v236_v7 }
  0x14 PF: > { %243 = sbr.rel (!%p1395_p3) target bundleno = 28 (0x1c), region = 59  ;;  %s245_s13 = sand.u32 (%p1395_p3), 1, %s1323_s22  }
  0x15   : > { %s1259_s14 = sshll.u32 (%p1395_p3), %s1327_s23, 5  ;;  %s1225_s15 = sshll.u32 (%p1395_p3), %s245_s13, 6 }
  0x16   : > { %s250_s18 = scalar_lea.vmem (%p1395_p3), %s1619_s1, %s1259_s14  ;;  %s247_s19 = scalar_lea.vmem (%p1395_p3), [#allocation3], %s1225_s15 }
  0x17   : > { %v263_v8 = vld [vmem:[%s250_s18] sm:$0xff] (%p1395_p3)  ;;  %v265_v9 = vld [vmem:[%s250_s18 + $0x8] sm:$0xff] (%p1395_p3)  ;;  %v267_v10 = vld [vmem:[%s250_s18 + $0x10] sm:$0xff] (%p1395_p3) }
  0x18   : > { %264 = vst [vmem:[%s247_s19] sm:$0xff] (%p1395_p3), %v263_v8  ;;  %266 = vst [vmem:[%s247_s19 + $0x8] sm:$0xff] (%p1395_p3), %v265_v9  ;;  %v269_v11 = vld [vmem:[%s250_s18 + $0x18] sm:$0xff] (%p1395_p3)  ;;  %v271_v12 = vld [vmem:[%s250_s18 + $0x40] sm:$0xff] (%p1395_p3) }
  0x19   : > { %268 = vst [vmem:[%s247_s19 + $0x10] sm:$0xff] %v267_v10  ;;  %v273_v13 = vld [vmem:[%s250_s18 + $0x48] sm:$0xff]  ;;  %270 = vst [vmem:[%s247_s19 + $0x18] sm:$0xff] %v269_v11  ;;  %v275_v14 = vld [vmem:[%s250_s18 + $0x50] sm:$0xff] }
  0x1a   : > { %272 = vst [vmem:[%s247_s19 + $0x20] sm:$0xff] %v271_v12  ;;  %274 = vst [vmem:[%s247_s19 + $0x28] sm:$0xff] %v273_v13  ;;  %v277_v15 = vld [vmem:[%s250_s18 + $0x58] sm:$0xff] }
  0x1b   : > { %276 = vst [vmem:[%s247_s19 + $0x30] sm:$0xff] %v275_v14  ;;  %278 = vst [vmem:[%s247_s19 + $0x38] sm:$0xff] %v277_v15 }
  0x1c PF: > { %p1228_p5 = scmp.ge.s32.totalorder %s1327_s23, 1  ;;  %p283_p6 = scmp.lt.s32.totalorder %s1327_s23, 3 }
  0x1e   : > { %p284_p7 = pnand %p1228_p5, %p283_p6 }
  0x1f   : > { %s290_s20 = sand.u32 (!%p284_p7), 1, %s1319_s21   ;;  %p1231_p8 = scmp.ne.s32.totalorder (!%p284_p7), %s1219_s24, 0 }
  0x20   : > { %287 = sbr.rel (%p284_p7) target bundleno = 489 (0x1e9), region = 82  ;;  %s1229_s26 = sshll.u32 (!%p284_p7), %s290_s20, 6 }
  0x21   : > { %s1417_s27 = scalar_lea.vmem (!%p284_p7), [#allocation2], %s1229_s26  ;;  %s1419_s29 = scalar_lea.vmem (!%p284_p7), [#allocation3], %s1229_s26 }
  0x25   : > { %330 = sbr.rel (%p1231_p8) target bundleno = 44 (0x2c), region = 94 }
  0x2a   : > { %v1329_v16 = vmov 0.0  }
  0x2b   : > { %331 = vst [vmem:[%s1624_s6] sm:$0xff] %v1329_v16 }
  0x2c PF: > { %v335_v17 = vld [vmem:[%s1417_s27 + $0x8] sm:$0xff]  ;;  %v337_v18 = vld [vmem:[%s1417_s27 + $0x18] sm:$0xff]  ;;  %v334_v19 = vld [vmem:[%s1417_s27] sm:$0xff]  ;;  %vm350_vm0 = vcmask 64512   ;;  %v1330_v22 = vmov 0.0   ;;  %v1331_v33 = vmov 0  }
  0x2d   : > { %387 = vmatprep.subr.mxu0 %v335_v17  ;;  %464 = vmatprep.subr.mxu1 %v337_v18  ;;  %v336_v20 = vld [vmem:[%s1417_s27 + $0x10] sm:$0xff]  ;;  %v332_v21 = vld [vmem:[%s1620_s2] sm:$0xff]  ;;  %v514_v23 = vld [vmem:[%s1419_s29 + $0x8] sm:$0xff] }
  0x2e   : > { %388 = vmatpush1.msra.mxu0 %v334_v19  ;;  %421 = vmatprep.mubr.f32.mxu0 %v1330_v22  ;;  %v513_v24 = vld [vmem:[%s1419_s29] sm:$0xff]  ;;  %v516_v25 = vld [vmem:[%s1419_s29 + $0x18] sm:$0xff]  ;;  %v1241_v26 = vld [vmem:[%s1417_s27 + $0x28] sm:$0xff] }
  0x2f   : > { %465 = vmatpush1.msra.mxu1 %v336_v20  ;;  %498 = vmatprep.mubr.f32.mxu1 %v1330_v22  ;;  %v333_v27 = vld [vmem:[%s1620_s2 + $0x8] sm:$0xff]  ;;  %v515_v28 = vld [vmem:[%s1419_s29 + $0x10] sm:$0xff]  ;;  %v1243_v29 = vld [vmem:[%s1417_s27 + $0x38] sm:$0xff] }
  0x30   : > { %1232 = vmatmul.mubr.msk.f32.vlgmr.msra.gmra.mxu0 %vm350_vm0, %v332_v21  ;;  %1234 = vmatmul.mubr.msk.f32.vlgmr.msra.gmra.mxu1 %vm350_vm0, %v332_v21  ;;  %v511_v30 = vld [vmem:[%s1622_s4] sm:$0xff]  ;;  %v1242_v32 = vld [vmem:[%s1417_s27 + $0x30] sm:$0xff]  ;;  %v1249_v34 = vld [vmem:[%s1419_s29 + $0x28] sm:$0xff] }
  0x31   : > { %565 = vmatprep.subr.mxu0 %v514_v23  ;;  %427 = vmatprep.mubr.f32.mxu0 %v1330_v22  ;;  %v1240_v31 = vld [vmem:[%s1417_s27 + $0x20] sm:$0xff]  ;;  %v1251_v35 = vld [vmem:[%s1419_s29 + $0x38] sm:$0xff]  ;;  %v512_v36 = vld [vmem:[%s1622_s4 + $0x8] sm:$0xff] }
  0x32   : > { %566 = vmatpush1.msra.mxu0 %v513_v24  ;;  %504 = vmatprep.mubr.f32.mxu1 %v1330_v22  ;;  %v338_v37 = vld [vmem:[%s1621_s3] sm:$0xff]  ;;  %v1250_v40 = vld [vmem:[%s1419_s29 + $0x30] sm:$0xff]  ;;  %v339_v41 = vld [vmem:[%s1621_s3 + $0x8] sm:$0xff] }
  0x33   : > { %642 = vmatprep.subr.mxu1 %v516_v25  ;;  %724 = vmatprep.subr.mxu0 %v1241_v26  ;;  %v517_v38 = vld [vmem:[%s1623_s5] sm:$0xff]  ;;  %v518_v42 = vld [vmem:[%s1623_s5 + $0x8] sm:$0xff] }
  0x34   : > { %1233 = vmatmul.mubr.msk.f32.gmra.mxu0 %vm350_vm0, %v333_v27  ;;  %1235 = vmatmul.mubr.msk.f32.gmra.mxu1 %vm350_vm0, %v333_v27  ;;  %v1248_v39 = vld [vmem:[%s1419_s29 + $0x20] sm:$0xff] }
  0x35   : > { %643 = vmatpush1.msra.mxu1 %v515_v28  ;;  %599 = vmatprep.mubr.f32.mxu0 %v1330_v22 }
  0x36   : > { %676 = vmatprep.mubr.f32.mxu1 %v1330_v22  ;;  %801 = vmatprep.subr.mxu1 %v1243_v29 }
  0x37   : > { %1303 = vset.pattern.permute.xlu0 %v1331_v33  ;;  %1304 = vset.pattern.permute.xlu1 %v1331_v33 }
  0x38   : > { %1236 = vmatmul.mubr.msk.f32.vlgmr.msra.gmra.mxu0 %vm350_vm0, %v511_v30  ;;  %1238 = vmatmul.mubr.msk.f32.vlgmr.msra.gmra.mxu1 %vm350_vm0, %v511_v30 }
  0x39   : > { %725 = vmatpush1.msra.mxu0 %v1240_v31  ;;  %605 = vmatprep.mubr.f32.mxu0 %v1330_v22 }
  0x3a   : > { %682 = vmatprep.mubr.f32.mxu1 %v1330_v22  ;;  %802 = vmatpush1.msra.mxu1 %v1242_v32 }
  0x3b   : > { %883 = vmatprep.subr.mxu0 %v1249_v34  ;;  %960 = vmatprep.subr.mxu1 %v1251_v35 }
  0x3c   : > { %1237 = vmatmul.mubr.msk.f32.gmra.mxu0 %vm350_vm0, %v512_v36  ;;  %1239 = vmatmul.mubr.msk.f32.gmra.mxu1 %vm350_vm0, %v512_v36 }
  0x3d   : > { %758 = vmatprep.mubr.f32.mxu0 %v1330_v22  ;;  %835 = vmatprep.mubr.f32.mxu1 %v1330_v22 }
  0x3e   : > { %342 = vperm.xlu0 %1303, %v338_v37   ;;  %521 = vperm.xlu1 %1304, %v517_v38  }
  0x40   : > { %1244 = vmatmul.mubr.msk.f32.vlgmr.msra.gmra.mxu0 %vm350_vm0, %v332_v21  ;;  %1246 = vmatmul.mubr.msk.f32.vlgmr.msra.gmra.mxu1 %vm350_vm0, %v332_v21 }
  0x41   : > { %884 = vmatpush1.msra.mxu0 %v1248_v39  ;;  %764 = vmatprep.mubr.f32.mxu0 %v1330_v22 }
  0x42   : > { %841 = vmatprep.mubr.f32.mxu1 %v1330_v22  ;;  %961 = vmatpush1.msra.mxu1 %v1250_v40 }
  0x43   : > { %347 = vperm.xlu0 %1303, %v339_v41   ;;  %526 = vperm.xlu1 %1304, %v518_v42  }
  0x44   : > { %1245 = vmatmul.mubr.msk.f32.gmra.mxu0 %vm350_vm0, %v333_v27  ;;  %1247 = vmatmul.mubr.msk.f32.gmra.mxu1 %vm350_vm0, %v333_v27 }
  0x45   : > { %917 = vmatprep.mubr.f32.mxu0 %v1330_v22  ;;  %994 = vmatprep.mubr.f32.mxu1 %v1330_v22 }
  0x48   : > { %1252 = vmatmul.mubr.msk.f32.vlgmr.msra.gmra.mxu0 %vm350_vm0, %v511_v30  ;;  %1254 = vmatmul.mubr.msk.f32.vlgmr.msra.gmra.mxu1 %vm350_vm0, %v511_v30 }
  0x49   : > { %923 = vmatprep.mubr.f32.mxu0 %v1330_v22  ;;  %1000 = vmatprep.mubr.f32.mxu1 %v1330_v22 }
  0x4c   : > { %1253 = vmatmul.mubr.msk.f32.gmra.mxu0 %vm350_vm0, %v512_v36  ;;  %1255 = vmatmul.mubr.msk.f32.gmra.mxu1 %vm350_vm0, %v512_v36 }
  0xb9   : > { %v1498_v47 = vpop.permute.xlu1 %521  ;;  %v343_v50 = vpop.permute.xlu0 %342 }
  0xbe   : > { %v1501_v56 = vpop.permute.xlu1 %526  ;;  %v1505_v60 = vpop.permute.xlu0 %347 }
  0xf0   : > { %v423_v43 = vpop.f32.mrf.mxu0  ;;  %v500_v44 = vpop.f32.mrf.mxu1 }
  0xf1   : > { %v1507_v61 = vadd.f32 %v423_v43, %v343_v50  ;;  %v1512_v3 = vadd.f32 %v500_v44, %v343_v50 }
  0xf2   : > { %v425_v45 = vpop.f32.mrf.mxu0  ;;  %v502_v46 = vpop.f32.mrf.mxu1 }
  0xf3   : > { %v1503_v59 = vadd.f32 %v425_v45, %v343_v50  ;;  %v1526_v15 = vadd.f32 %v502_v46, %v343_v50 }
  0xf4   : > { %v429_v48 = vpop.f32.mrf.mxu0  ;;  %v506_v49 = vpop.f32.mrf.mxu1 }
  0xf5   : > { %v1521_v8 = vadd.f32 %v429_v48, %v1505_v60  ;;  %v1529_v16 = vadd.f32 %v506_v49, %v1505_v60 }
  0xf6   : > { %v431_v51 = vpop.f32.mrf.mxu0  ;;  %v508_v52 = vpop.f32.mrf.mxu1 }
  0xf7   : > { %v1517_v6 = vadd.f32 %v431_v51, %v1505_v60  ;;  %v1537_v31 = vadd.f32 %v508_v52, %v1505_v60 }
  0xf8   : > { %v601_v53 = vpop.f32.mrf.mxu0  ;;  %v678_v54 = vpop.f32.mrf.mxu1 }
  0xf9   : > { %v602_v55 = vadd.f32 %v601_v53, %v1498_v47  ;;  %v679_v62 = vadd.f32 %v678_v54, %v1498_v47 }
  0xfa   : > { %v603_v57 = vpop.f32.mrf.mxu0  ;;  %v680_v58 = vpop.f32.mrf.mxu1 }
  0xfb   : > { %v604_v63 = vadd.f32 %v603_v57, %v1498_v47  ;;  %v1007_v2 = vmul.f32 %v602_v55, %v1507_v61  ;;  %v681_v7 = vadd.f32 %v680_v58, %v1498_v47  ;;  %v1009_v11 = vmul.f32 %v679_v62, %v1512_v3 }
  0xfc   : > { %v607_v0 = vpop.f32.mrf.mxu0  ;;  %v684_v1 = vpop.f32.mrf.mxu1 }
  0xfd   : > { %v1008_v4 = vmul.f32 %v604_v63, %v1503_v59  ;;  %v608_v5 = vadd.f32 %v607_v0, %v1501_v56  ;;  %v685_v13 = vadd.f32 %v684_v1, %v1501_v56  ;;  %v1010_v23 = vmul.f32 %v681_v7, %v1526_v15 }
  0xfe   : > { %v609_v9 = vpop.f32.mrf.mxu0  ;;  %v686_v10 = vpop.f32.mrf.mxu1 }
  0xff   : > { %v1011_v12 = vadd.f32 %v1008_v4, %v1007_v2  ;;  %v610_v14 = vadd.f32 %v609_v9, %v1501_v56  ;;  %v1023_v19 = vmul.f32 %v608_v5, %v1521_v8  ;;  %v687_v24 = vadd.f32 %v686_v10, %v1501_v56 }
 0x100   : > { %v760_v17 = vpop.f32.mrf.mxu0  ;;  %v837_v18 = vpop.f32.mrf.mxu1  ;;  %v1025_v27 = vmul.f32 %v685_v13, %v1529_v16 }
 0x101   : > { %v1024_v20 = vmul.f32 %v610_v14, %v1517_v6  ;;  %v761_v21 = vadd.f32 %v760_v17, %v343_v50  ;;  %v1012_v22 = vadd.f32 %v1011_v12, %v1009_v11  ;;  %v838_v29 = vadd.f32 %v837_v18, %v343_v50 }
 0x102   : > { %v762_v25 = vpop.f32.mrf.mxu0  ;;  %v839_v26 = vpop.f32.mrf.mxu1  ;;  %v1026_v39 = vmul.f32 %v687_v24, %v1537_v31 }
 0x103   : > { %v1027_v28 = vadd.f32 %v1024_v20, %v1023_v19  ;;  %v763_v30 = vadd.f32 %v762_v25, %v343_v50  ;;  %v1013_v34 = vadd.f32 %v1012_v22, %v1010_v23  ;;  %v1087_v35 = vmul.f32 %v761_v21, %v602_v55 }
 0x104   : > { %v766_v32 = vpop.f32.mrf.mxu0  ;;  %v843_v33 = vpop.f32.mrf.mxu1  ;;  %v840_v40 = vadd.f32 %v839_v26, %v343_v50  ;;  %v1089_v43 = vmul.f32 %v838_v29, %v679_v62 }
 0x105   : > { %v1088_v36 = vmul.f32 %v763_v30, %v604_v63  ;;  %v767_v37 = vadd.f32 %v766_v32, %v1505_v60  ;;  %v1028_v38 = vadd.f32 %v1027_v28, %v1025_v27  ;;  %1014 = vadd.xlane.f32.xlu0 %v1013_v34  ;;  %v844_v45 = vadd.f32 %v843_v33, %v1505_v60 }
 0x106   : > { %v768_v41 = vpop.f32.mrf.mxu0  ;;  %v845_v42 = vpop.f32.mrf.mxu1  ;;  %v1090_v57 = vmul.f32 %v840_v40, %v681_v7 }
 0x107   : > { %v1091_v44 = vadd.f32 %v1088_v36, %v1087_v35  ;;  %v769_v46 = vadd.f32 %v768_v41, %v1505_v60  ;;  %v1029_v51 = vadd.f32 %v1028_v38, %v1026_v39  ;;  %v1063_v52 = vmul.f32 %v767_v37, %v608_v5 }
 0x108   : > { %v919_v48 = vpop.f32.mrf.mxu0  ;;  %v996_v49 = vpop.f32.mrf.mxu1  ;;  %v1065_v63 = vmul.f32 %v844_v45, %v685_v13  ;;  %v846_v62 = vadd.f32 %v845_v42, %v1505_v60 }
 0x109   : > { %v1064_v53 = vmul.f32 %v769_v46, %v610_v14  ;;  %v920_v54 = vadd.f32 %v919_v48, %v1498_v47  ;;  %v1092_v55 = vadd.f32 %v1091_v44, %v1089_v43  ;;  %1030 = vadd.xlane.f32.xlu1 %v1029_v51  ;;  %v997_v5 = vadd.f32 %v996_v49, %v1498_v47 }
 0x10a   : > { %v921_v50 = vpop.f32.mrf.mxu0  ;;  %v998_v58 = vpop.f32.mrf.mxu1  ;;  %v1066_v18 = vmul.f32 %v846_v62, %v687_v24 }
 0x10b   : > { %v1067_v0 = vadd.f32 %v1064_v53, %v1063_v52  ;;  %v922_v1 = vadd.f32 %v921_v50, %v1498_v47  ;;  %v1093_v9 = vadd.f32 %v1092_v55, %v1090_v57  ;;  %v1047_v10 = vmul.f32 %v920_v54, %v1507_v61 }
 0x10c   : > { %v925_v2 = vpop.f32.mrf.mxu0  ;;  %v1002_v4 = vpop.f32.mrf.mxu1  ;;  %v999_v11 = vadd.f32 %v998_v58, %v1498_v47  ;;  %v1127_v7 = vmul.f32 %v920_v54, %v761_v21  ;;  %v1049_v25 = vmul.f32 %v997_v5, %v1512_v3  ;;  %v1129_v47 = vmul.f32 %v997_v5, %v838_v29 }
 0x10d   : > { %v1068_v12 = vadd.f32 %v1067_v0, %v1065_v63  ;;  %v1048_v14 = vmul.f32 %v922_v1, %v1503_v59  ;;  %v1128_v17 = vmul.f32 %v922_v1, %v763_v30  ;;  %v926_v13 = vadd.f32 %v925_v2, %v1501_v56  ;;  %1094 = vadd.xlane.f32.xlu1 %v1093_v9 }
 0x10e   : > { %v927_v60 = vpop.f32.mrf.mxu0  ;;  %v1004_v19 = vpop.f32.mrf.mxu1  ;;  %v1003_v23 = vadd.f32 %v1002_v4, %v1501_v56  ;;  %v1050_v21 = vmul.f32 %v999_v11, %v1526_v15  ;;  %v1130_v30 = vmul.f32 %v999_v11, %v840_v40 }
 0x10f   : > { %v1051_v20 = vadd.f32 %v1048_v14, %v1047_v10  ;;  %v1131_v22 = vadd.f32 %v1128_v17, %v1127_v7  ;;  %v928_v61 = vadd.f32 %v927_v60, %v1501_v56  ;;  %v1069_v26 = vadd.f32 %v1068_v12, %v1066_v18 }
 0x110   : > { %v1103_v59 = vmul.f32 %v926_v13, %v1521_v8  ;;  %v1005_v24 = vadd.f32 %v1004_v19, %v1501_v56  ;;  %v1143_v32 = vmul.f32 %v926_v13, %v767_v37  ;;  %v1105_v35 = vmul.f32 %v1003_v23, %v1529_v16 }
 0x111   : > { %v1104_v27 = vmul.f32 %v928_v61, %v1517_v6  ;;  %v1144_v28 = vmul.f32 %v928_v61, %v769_v46  ;;  %1070 = vadd.xlane.f32.xlu0 %v1069_v26  ;;  %v1132_v33 = vadd.f32 %v1131_v22, %v1129_v47  ;;  %v1052_v34 = vadd.f32 %v1051_v20, %v1049_v25 }
 0x112   : > { %v1106_v15 = vmul.f32 %v1005_v24, %v1537_v31  ;;  %v1145_v8 = vmul.f32 %v1003_v23, %v844_v45  ;;  %v1146_v56 = vmul.f32 %v1005_v24, %v846_v62 }
 0x113   : > { %v1107_v36 = vadd.f32 %v1104_v27, %v1103_v59  ;;  %v1147_v3 = vadd.f32 %v1144_v28, %v1143_v32  ;;  %v1133_v29 = vadd.f32 %v1132_v33, %v1130_v30  ;;  %v1053_v38 = vadd.f32 %v1052_v34, %v1050_v21 }
 0x115   : > { %v1108_v39 = vadd.f32 %v1107_v36, %v1105_v35  ;;  %1134 = vadd.xlane.f32.xlu1 %v1133_v29  ;;  %1054 = vadd.xlane.f32.xlu0 %v1053_v38  ;;  %v1148_v41 = vadd.f32 %v1147_v3, %v1145_v8  ;;  %v1039_v38 = vld [vmem:[%s1624_s6] sm:$0x1]  ;;  %v1043_v8 = vld [vmem:[%s1624_s6 + $0x4] sm:$0x1] }
 0x117   : > { %v1109_v6 = vadd.f32 %v1108_v39, %v1106_v15  ;;  %v1149_v37 = vadd.f32 %v1148_v41, %v1146_v56  ;;  %v1079_v56 = vld [vmem:[%s1624_s6 + $0x1] sm:$0x1] }
 0x119   : > { %1110 = vadd.xlane.f32.xlu0 %v1109_v6 }
 0x11d   : > { %1150 = vadd.xlane.f32.xlu0 %v1149_v37  ;;  %v1083_v37 = vld [vmem:[%s1624_s6 + $0x5] sm:$0x1] }
 0x18e   : > { %v1015_v40 = vpop.xlane.xlu0 %1014 }
 0x18f   : > { %v1016_v42 = vrot.slane %v1015_v40, 4 }
 0x191   : > { %v1017_v43 = vadd.f32 %v1016_v42, %v1015_v40  ;;  %v1119_v42 = vld [vmem:[%s1624_s6 + $0x2] sm:$0x1] }
 0x192   : > { %v1031_v16 = vpop.xlane.xlu1 %1030 }
 0x193   : > { %v1018_v44 = vrot.slane %v1017_v43, 2  ;;  %v1032_v46 = vrot.slane %v1031_v16, 4 }
 0x195   : > { %v1033_v48 = vadd.f32 %v1032_v46, %v1031_v16  ;;  %v1019_v49 = vadd.f32 %v1018_v44, %v1017_v43 }
 0x196   : > { %v1095_v51 = vpop.xlane.xlu1 %1094 }
 0x197   : > { %v1034_v31 = vrot.slane %v1033_v48, 2  ;;  %v1020_v52 = vrot.slane %v1019_v49, 1  ;;  %v1096_v45 = vrot.slane %v1095_v51, 4 }
 0x199   : > { %v1021_v53 = vadd.f32 %v1020_v52, %v1019_v49  ;;  %v1035_v54 = vadd.f32 %v1034_v31, %v1033_v48  ;;  %v1097_v50 = vadd.f32 %v1096_v45, %v1095_v51  ;;  %v1123_v48 = vld [vmem:[%s1624_s6 + $0x6] sm:$0x1]  ;;  %v1159_v51 = vld [vmem:[%s1624_s6 + $0x3] sm:$0x1] }
 0x19a   : > { %v1071_v55 = vpop.xlane.xlu0 %1070 }
 0x19b   : > { %1260 = vpush %v1021_v53  ;;  %v1036_v57 = vrot.slane %v1035_v54, 1  ;;  %v1072_v58 = vrot.slane %v1071_v55, 4  ;;  %v1098_v2 = vrot.slane %v1097_v50, 2 }
 0x19d   : > { %v1037_v63 = vadd.f32 %v1036_v57, %v1035_v54  ;;  %v1073_v0 = vadd.f32 %v1072_v58, %v1071_v55  ;;  %v1099_v60 = vadd.f32 %v1098_v2, %v1097_v50  ;;  %v1163_v54 = vld [vmem:[%s1624_s6 + $0x7] sm:$0x1] }
 0x19e   : > { %v1135_v62 = vpop.xlane.xlu1 %1134  ;;  %v1055_v1 = vpop.xlane.xlu0 %1054 }
 0x19f   : > { %1262 = vpush %v1037_v63  ;;  %v1074_v4 = vrot.slane %v1073_v0, 2  ;;  %v1136_v9 = vrot.slane %v1135_v62, 4  ;;  %v1056_v10 = vrot.slane %v1055_v1, 4  ;;  %v1100_v21 = vrot.slane %v1099_v60, 1 }
 0x1a1   : > { %v1137_v5 = vadd.f32 %v1136_v9, %v1135_v62  ;;  %v1057_v11 = vadd.f32 %v1056_v10, %v1055_v1  ;;  %v1075_v7 = vadd.f32 %v1074_v4, %v1073_v0  ;;  %v1101_v32 = vadd.f32 %v1100_v21, %v1099_v60 }
 0x1a2   : > { %v1111_v12 = vpop.xlane.xlu0 %1110 }
 0x1a3   : > { %v1138_v14 = vrot.slane %v1137_v5, 2  ;;  %v1058_v17 = vrot.slane %v1057_v11, 2  ;;  %v1112_v13 = vrot.slane %v1111_v12, 4  ;;  %v1076_v23 = vrot.slane %v1075_v7, 1 }
 0x1a5   : > { %v1113_v18 = vadd.f32 %v1112_v13, %v1111_v12  ;;  %v1059_v19 = vadd.f32 %v1058_v17, %v1057_v11  ;;  %v1139_v20 = vadd.f32 %v1138_v14, %v1137_v5  ;;  %v1077_v28 = vadd.f32 %v1076_v23, %v1075_v7 }
 0x1a6   : > { %v1151_v22 = vpop.xlane.xlu0 %1150 }
 0x1a7   : > { %v1114_v61 = vrot.slane %v1113_v18, 2  ;;  %v1152_v25 = vrot.slane %v1151_v22, 4  ;;  %v1060_v47 = vrot.slane %v1059_v19, 1  ;;  %v1140_v24 = vrot.slane %v1139_v20, 1 }
 0x1a9   : > { %v1153_v26 = vadd.f32 %v1152_v25, %v1151_v22  ;;  %v1061_v59 = vadd.f32 %v1060_v47, %v1059_v19  ;;  %v1115_v27 = vadd.f32 %v1114_v61, %v1113_v18  ;;  %v1141_v36 = vadd.f32 %v1140_v24, %v1139_v20 }
 0x1ab   : > { %v1154_v30 = vrot.slane %v1153_v26, 2  ;;  %1264 = vpush %v1061_v59  ;;  %v1116_v33 = vrot.slane %v1115_v27, 1 }
 0x1ac   : > { %1266 = vpush %v1077_v28 }
 0x1ad   : > { %v1155_v34 = vadd.f32 %v1154_v30, %v1153_v26  ;;  %1268 = vpush %v1101_v32  ;;  %v1117_v35 = vadd.f32 %v1116_v33, %v1115_v27 }
 0x1af   : > { %1270 = vpush %v1117_v35  ;;  %v1156_v3 = vrot.slane %v1155_v34, 1 }
 0x1b0   : > { %1272 = vpush %v1141_v36 }
 0x1b1   : > { %v1157_v29 = vadd.f32 %v1156_v3, %v1155_v34 }
 0x1b3   : > { %1274 = vpush %v1157_v29 }
 0x1cc   : > { %s1261_s29 = spop %1260 }
 0x1cd   : > { %v1040_v15 = vstv %s1261_s29 }
 0x1ce   : > { %v1041_v39 = vadd.f32 %v1040_v15, %v1039_v38 }
 0x1d0   : > { %1042 = vst [vmem:[%s1624_s6] sm:$0x1] %v1041_v39  ;;  %s1263_s24 = spop %1262 }
 0x1d1   : > { %v1044_v6 = vstv %s1263_s24 }
 0x1d2   : > { %v1045_v41 = vadd.f32 %v1044_v6, %v1043_v8 }
 0x1d4   : > { %1046 = vst [vmem:[%s1624_s6 + $0x4] sm:$0x1] %v1045_v41 }
 0x1dc   : > { %s1265_s12 = spop %1264 }
 0x1dd   : > { %v1080_v40 = vstv %s1265_s12  ;;  %s1267_s15 = spop %1266 }
 0x1de   : > { %v1081_v43 = vadd.f32 %v1080_v40, %v1079_v56  ;;  %v1084_v16 = vstv %s1267_s15  ;;  %s1269_s18 = spop %1268 }
 0x1df   : > { %v1085_v44 = vadd.f32 %v1084_v16, %v1083_v37  ;;  %v1120_v46 = vstv %s1269_s18 }
 0x1e0   : > { %1082 = vst [vmem:[%s1624_s6 + $0x1] sm:$0x1] %v1081_v43  ;;  %v1121_v49 = vadd.f32 %v1120_v46, %v1119_v42  ;;  %s1271_s29 = spop %1270 }
 0x1e1   : > { %1086 = vst [vmem:[%s1624_s6 + $0x5] sm:$0x1] %v1085_v44  ;;  %v1124_v31 = vstv %s1271_s29  ;;  %s1273_s24 = spop %1272 }
 0x1e2   : > { %1122 = vst [vmem:[%s1624_s6 + $0x2] sm:$0x1] %v1121_v49  ;;  %v1125_v52 = vadd.f32 %v1124_v31, %v1123_v48  ;;  %v1160_v45 = vstv %s1273_s24 }
 0x1e3   : > { %v1161_v53 = vadd.f32 %v1160_v45, %v1159_v51 }
 0x1e4   : > { %1126 = vst [vmem:[%s1624_s6 + $0x6] sm:$0x1] %v1125_v52  ;;  %s1275_s14 = spop %1274 }
 0x1e5   : > { %1162 = vst [vmem:[%s1624_s6 + $0x3] sm:$0x1] %v1161_v53  ;;  %v1164_v55 = vstv %s1275_s14 }
 0x1e6   : > { %v1165_v57 = vadd.f32 %v1164_v55, %v1163_v54 }
 0x1e8   : > { %1166 = vst [vmem:[%s1624_s6 + $0x7] sm:$0x1] %v1165_v57 }
 0x1e9 PF: > { %p13_p9 = scmp.ge.s32.totalorder %s1384_s25, 4   ;;  %s1626_s21 = smov %s1323_s22 }
 0x1ea   : > { %s1627_s22 = smov %s1393_s28  ;;  %s1628_s23 = smov %s1384_s25 }
 0x1eb   :  { %15 = sbr.rel (!%p13_p9) target bundleno = 2 (0x2), region = 135 }

</bundles_post_ra>
